<compile_context>
chip_gen: v6e
topology: v6e:2x2x1
jax: 0.10.0
libtpu: 0.0.40
codegen_flags: <defaults>
</compile_context>

<pallas_src>
import functools
import math

import numpy as np
import jax
import jax.numpy as jnp
from jax.experimental import pallas as pl
from jax.experimental.pallas import tpu as pltpu


# ----------------------------- in-kernel math ------------------------------ #
_INV_SQRT2 = 1.0 / math.sqrt(2.0)
_A1, _A2, _A3, _A4, _A5 = 0.254829592, -0.284496736, 1.421413741, -1.453152027, 1.061405429
_P = 0.3275911


def _gelu_exact(x):
    """PyTorch nn.GELU() default (erf form) via A&S 7.1.26 (|err| <= 1.5e-7).

    The 1/(1+p|z|) divide goes through the EUP (approx reciprocal + one Newton
    step -> ~f32 accuracy); exp also runs on the EUP, keeping the VPU free.
    """
    z = x * _INV_SQRT2
    az = jnp.abs(z)
    d = 1.0 + _P * az
    t = pl.reciprocal(d, approx=True)
    t = t * (2.0 - d * t)                              # one Newton refinement step
    poly = ((((_A5 * t + _A4) * t + _A3) * t + _A2) * t + _A1) * t
    erf_az = 1.0 - poly * jnp.exp(-az * az)
    erf_z = jnp.where(z >= 0.0, erf_az, -erf_az)
    return 0.5 * x * (1.0 + erf_z)


def _layernorm_channels(h, w, b, n_valid, eps):
    """LayerNorm2d: normalize over the channel axis (axis 0 of the (rows, pix) slab).

    Statistics use only the first `n_valid` rows (the real channels); the
    affine is applied to all rows (padded rows have w=b=0 -> become exact 0).
    """
    hv = h if n_valid == h.shape[0] else h[:n_valid]
    mu = jnp.mean(hv, axis=0, keepdims=True)
    var = jnp.mean(jnp.square(hv - mu), axis=0, keepdims=True)
    return (h - mu) * jax.lax.rsqrt(var + eps) * w + b


# --------------------------------- kernel ---------------------------------- #
def resnet_block_v2_kernel(x_ref, pv_ref, mask_ref, w1_ref, w2_ref, w3_ref, o_ref,
                           *, C, Cp, E, H, W, B, eps):
    f32, bf16 = jnp.float32, jnp.bfloat16
    HW = H * W
    L = B * HW

    # Activations as a (Cp, B*HW) slab: pixels on lanes (lane-dense), per-image
    # slabs side by side (each HW chunk is a 128-multiple at these shapes).
    if B == 1:
        x = x_ref[0].astype(f32)
    else:
        x = jnp.concatenate([x_ref[b] for b in range(B)], axis=1).astype(f32)

    # Packed per-channel params: one grid-invariant (Emax, 9) slab, sliced here.
    pv = pv_ref[...]
    ln1w, ln1b, b1 = pv[:Cp, 0:1], pv[:Cp, 1:2], pv[:C, 2:3]
    ln2w, ln2b, b2 = pv[:C, 3:4], pv[:C, 4:5], pv[:E, 5:6]
    ln3w, ln3b, b3 = pv[:E, 6:7], pv[:E, 7:8], pv[:C, 8:9]

    # --- LN -> GELU (stats over the C real channels; padded rows become 0) ---
    h = _gelu_exact(_layernorm_channels(x, ln1w, ln1b, C, eps))            # (Cp, L)

    # --- Conv2d 3x3, padding='same' ---
    # 9 static lane rotations (XLU) + 0/1 boundary masks; taps stacked along
    # the contraction axis (tile-aligned since Cp % 8 == 0) and reduced with a
    # SINGLE MXU matmul against the pre-flattened (C, 9*Cp) weight.
    taps = []
    for ky in range(3):
        for kx in range(3):
            dy, dx = ky - 1, kx - 1
            off = dy * W + dx
            tap = h if off == 0 else pltpu.roll(h, shift=(-off) % L, axis=1)
            if not (dy == 0 and dx == 0):
                tap = tap * mask_ref[ky * 3 + kx]                          # (Cp,L)*(1,L)
            taps.append(tap)
    stacked = jnp.concatenate(taps, axis=0)                                # (9*Cp, L) f32
    h = jnp.dot(w1_ref[...], stacked.astype(bf16),
                preferred_element_type=f32) + b1                           # (C, L)

    # --- LN -> GELU -> Conv1x1 (C -> E) ---
    h = _gelu_exact(_layernorm_channels(h, ln2w, ln2b, C, eps))
    h = jnp.dot(w2_ref[...], h.astype(bf16), preferred_element_type=f32) + b2   # (E, L)

    # --- LN -> GELU -> Conv1x1 (E -> C) ---
    h = _gelu_exact(_layernorm_channels(h, ln3w, ln3b, E, eps))
    h = jnp.dot(w3_ref[...], h.astype(bf16), preferred_element_type=f32) + b3   # (C, L)

    # Lane-dense stores (HW-sized, 128-aligned slices per image).
    if B == 1:
        o_ref[0] = h.astype(o_ref.dtype)
    else:
        for b_im in range(B):
            o_ref[b_im] = h[:, b_im * HW:(b_im + 1) * HW].astype(o_ref.dtype)


# ------------------------- wrapper / host-side prep ------------------------- #
def _build_tap_masks(H, W, B):
    """0/1 validity mask per 3x3 tap for the zero-padded 'same' conv, indexed by
    position on the (B*H*W,)-long lane axis (periodic per image, so rolls that
    cross image or wrap-around boundaries are zeroed exactly)."""
    HW = H * W
    L = B * HW
    g = np.arange(L)
    px = g % W
    py = (g // W) % H
    masks = np.ones((9, 1, L), np.float32)
    for ky in range(3):
        for kx in range(3):
            dy, dx = ky - 1, kx - 1
            valid = ((py + dy >= 0) & (py + dy < H) &
                     (px + dx >= 0) & (px + dx < W))
            masks[ky * 3 + kx, 0, :] = valid.astype(np.float32)
    return masks


def _pick_batch_tile(N, cap=8):
    """Largest divisor of N that still leaves >= 2 grid steps (keeps both v7x
    TensorCores busy), capped to keep per-step VMEM modest."""
    if N <= 1:
        return 1
    best = 1
    for d in range(1, min(N // 2, cap) + 1):
        if N % d == 0:
            best = d
    return best


def resnet_block_v2(x_nchw, params, *, eps=1e-6):
    N, C, H, W = x_nchw.shape
    E = params["w2"].shape[0]
    HW = H * W
    Cp = ((C + 7) // 8) * 8            # pad channels so tap stacking is tile-aligned
    Emax = max(E, Cp)

    B_tile = _pick_batch_tile(N)
    grid = (N // B_tile,)

    # Free contiguous reshape only (no HBM transpose passes); zero-pad channels.
    x2 = x_nchw.reshape(N, C, HW)
    if Cp != C:
        x2 = jnp.pad(x2, ((0, 0), (0, Cp - C), (0, 0)))

    # Conv weights: PyTorch OIHW -> kernel layouts (bf16 MXU operands).
    w1 = jnp.transpose(jnp.asarray(params["w1"], jnp.float32), (0, 2, 3, 1))   # (C,3,3,Cin)
    if Cp != C:
        w1 = jnp.pad(w1, ((0, 0), (0, 0), (0, 0), (0, Cp - C)))
    w1_flat = w1.reshape(C, 9 * Cp).astype(jnp.bfloat16)                       # (C, 9*Cp)
    w2_k = params["w2"][:, :, 0, 0].astype(jnp.bfloat16)                       # (E, C)
    w3_k = params["w3"][:, :, 0, 0].astype(jnp.bfloat16)                       # (C, E)

    # All per-channel f32 vectors packed into one grid-invariant (Emax, 9) slab.
    def col(v):
        v = jnp.asarray(v, jnp.float32).reshape(-1)
        return jnp.pad(v, (0, Emax - v.shape[0]))
    pvec = jnp.stack([col(params["ln1w"]), col(params["ln1b"]), col(params["b1"]),
                      col(params["ln2w"]), col(params["ln2b"]), col(params["b2"]),
                      col(params["ln3w"]), col(params["ln3b"]), col(params["b3"])],
                     axis=1)                                                   # (Emax, 9)

    masks = jnp.asarray(_build_tap_masks(H, W, B_tile))                        # (9,1,B_tile*HW)

    def const_spec(shape):
        return pl.BlockSpec(shape, lambda n, _r=len(shape): (0,) * _r)

    kernel = functools.partial(resnet_block_v2_kernel,
                               C=C, Cp=Cp, E=E, H=H, W=W, B=B_tile, eps=eps)

    out2 = pl.pallas_call(
        kernel,
        out_shape=jax.ShapeDtypeStruct((N, C, HW), x_nchw.dtype),
        grid=grid,
        in_specs=[
            pl.BlockSpec((B_tile, Cp, HW), lambda n: (n, 0, 0)),   # x (padded channels)
            const_spec((Emax, 9)),                                 # packed per-channel params
            const_spec((9, 1, B_tile * HW)),                       # conv boundary masks
            const_spec((C, 9 * Cp)),                               # conv3x3 weight (fused taps)
            const_spec((E, C)),                                    # conv1x1 C->E
            const_spec((C, E)),                                    # conv1x1 E->C
        ],
        out_specs=pl.BlockSpec((B_tile, C, HW), lambda n: (n, 0, 0)),
        compiler_params=pltpu.CompilerParams(
            dimension_semantics=("parallel",)),                    # batch blocks across TCs (v7x)
    )(x2, pvec, masks, w1_flat, w2_k, w3_k)
    return out2.reshape(N, C, H, W)


# ------------------------- plain-JAX reference ------------------------------ #
def reference_forward(x, p, eps=1e-6):
    """Module math in NCHW.  Conv operands are rounded to bf16 with f32
    accumulation, mirroring the kernel's MXU precision policy, so the
    comparison isolates implementation errors from operand rounding."""
    f32, bf16 = jnp.float32, jnp.bfloat16

    def ln(h, w, b):
        mu = jnp.mean(h, axis=1, keepdims=True)
        var = jnp.mean(jnp.square(h - mu), axis=1, keepdims=True)
        return ((h - mu) * jax.lax.rsqrt(var + eps)
                * w.reshape(1, -1, 1, 1) + b.reshape(1, -1, 1, 1))

    def gelu(h):  # exact (erf) GELU, as in PyTorch nn.GELU()
        return 0.5 * h * (1.0 + jax.lax.erf(h / math.sqrt(2.0)))

    def conv(h, w, b):
        out = jax.lax.conv_general_dilated(
            h.astype(bf16), w.astype(bf16), (1, 1), "SAME",
            dimension_numbers=("NCHW", "OIHW", "NCHW"),
            precision=jax.lax.Precision.HIGHEST,
            preferred_element_type=f32)
        return out + b.reshape(1, -1, 1, 1)

    h = x.astype(f32)
    h = conv(gelu(ln(h, p["ln1w"], p["ln1b"])), p["w1"], p["b1"])
    h = conv(gelu(ln(h, p["ln2w"], p["ln2b"])), p["w2"], p["b2"])
    h = conv(gelu(ln(h, p["ln3w"], p["ln3b"])), p["w3"], p["b3"])
    return h


# ---------------------------------- main ------------------------------------ #
if __name__ == "__main__":
    N, C, H, W = 2, 4, 16, 16
    expansion = 4
    E = C * expansion
    eps = 1e-6

    key = jax.random.PRNGKey(0)
    ks = jax.random.split(key, 13)

    params = {
        # LayerNorm2d affine params (random, so the affine path is exercised)
        "ln1w": 1.0 + 0.1 * jax.random.normal(ks[0], (C,), jnp.float32),
        "ln1b": 0.1 * jax.random.normal(ks[1], (C,), jnp.float32),
        "ln2w": 1.0 + 0.1 * jax.random.normal(ks[2], (C,), jnp.float32),
        "ln2b": 0.1 * jax.random.normal(ks[3], (C,), jnp.float32),
        "ln3w": 1.0 + 0.1 * jax.random.normal(ks[4], (E,), jnp.float32),
        "ln3b": 0.1 * jax.random.normal(ks[5], (E,), jnp.float32),
        # Conv weights/biases in PyTorch-native OIHW layout
        "w1": 0.1 * jax.random.normal(ks[6], (C, C, 3, 3), jnp.float32),
        "b1": 0.1 * jax.random.normal(ks[7], (C,), jnp.float32),
        "w2": 0.1 * jax.random.normal(ks[8], (E, C, 1, 1), jnp.float32),
        "b2": 0.1 * jax.random.normal(ks[9], (E,), jnp.float32),
        "w3": 0.1 * jax.random.normal(ks[10], (C, E, 1, 1), jnp.float32),
        "b3": 0.1 * jax.random.normal(ks[11], (C,), jnp.float32),
    }

    x = jax.random.normal(ks[12], (N, C, H, W), jnp.float32)

    out = jax.block_until_ready(resnet_block_v2(x, params, eps=eps))
    ref = jax.block_until_ready(reference_forward(x, params, eps=eps))

    assert out.shape == (N, C, H, W), out.shape
    assert out.dtype == jnp.float32
    # bf16 MXU operands / f32 accumulation in both kernel and reference; residual
    # differences are accumulation order + the erf polynomial (~1e-4 level).
    if not jnp.allclose(out, ref, atol=5e-3, rtol=5e-3):
        max_err = float(jnp.max(jnp.abs(out - ref)))
        raise AssertionError(f"kernel/reference mismatch, max abs err = {max_err}")

    print("KERNEL_OK")
</pallas_src>

<mosaic_0001>
module attributes {stable_mosaic.version = 11 : i64} {
  func.func @resnet_block_v2_kernel(%arg0: i32, %arg1: memref<1x8x256xf32, #tpu.memory_space<vmem>>, %arg2: memref<16x9xf32, #tpu.memory_space<vmem>>, %arg3: memref<9x1x256xf32, #tpu.memory_space<vmem>>, %arg4: memref<4x72xbf16, #tpu.memory_space<vmem>>, %arg5: memref<16x4xbf16, #tpu.memory_space<vmem>>, %arg6: memref<4x16xbf16, #tpu.memory_space<vmem>>, %arg7: memref<1x4x256xf32, #tpu.memory_space<vmem>>) attributes {dimension_semantics = [#tpu.dimension_semantics<parallel>], iteration_bounds = array<i64: 2>, scalar_prefetch = 0 : i64, scratch_operands = 0 : i64, tpu.core_type = #tpu.core_type<tc>, window_params = [{transform_indices = @transform_0, window_bounds = array<i64: 1, 8, 256>}, {pipeline_mode = #tpu.pipeline_mode<synchronous>, transform_indices = @transform_1, window_bounds = array<i64: 16, 9>}, {pipeline_mode = #tpu.pipeline_mode<synchronous>, transform_indices = @transform_2, window_bounds = array<i64: 9, 1, 256>}, {pipeline_mode = #tpu.pipeline_mode<synchronous>, transform_indices = @transform_3, window_bounds = array<i64: 4, 72>}, {pipeline_mode = #tpu.pipeline_mode<synchronous>, transform_indices = @transform_4, window_bounds = array<i64: 16, 4>}, {pipeline_mode = #tpu.pipeline_mode<synchronous>, transform_indices = @transform_5, window_bounds = array<i64: 4, 16>}, {transform_indices = @transform_6, window_bounds = array<i64: 1, 4, 256>}]} {
    %c0 = arith.constant 0 : index
    %c0_0 = arith.constant 0 : index
    %c0_1 = arith.constant 0 : index
    %0 = vector.load %arg1[%c0, %c0_0, %c0_1] : memref<1x8x256xf32, #tpu.memory_space<vmem>>, vector<1x8x256xf32>
    %1 = vector.shape_cast %0 : vector<1x8x256xf32> to vector<8x256xf32>
    %c0_2 = arith.constant 0 : index
    %c0_3 = arith.constant 0 : index
    %2 = vector.load %arg2[%c0_2, %c0_3] : memref<16x9xf32, #tpu.memory_space<vmem>>, vector<16x9xf32>
    %3 = vector.extract_strided_slice %2 {offsets = [0, 0], sizes = [8, 1], strides = [1, 1]} : vector<16x9xf32> to vector<8x1xf32>
    %4 = vector.extract_strided_slice %2 {offsets = [0, 1], sizes = [8, 1], strides = [1, 1]} : vector<16x9xf32> to vector<8x1xf32>
    %5 = vector.extract_strided_slice %2 {offsets = [0, 2], sizes = [4, 1], strides = [1, 1]} : vector<16x9xf32> to vector<4x1xf32>
    %6 = vector.extract_strided_slice %2 {offsets = [0, 3], sizes = [4, 1], strides = [1, 1]} : vector<16x9xf32> to vector<4x1xf32>
    %7 = vector.extract_strided_slice %2 {offsets = [0, 4], sizes = [4, 1], strides = [1, 1]} : vector<16x9xf32> to vector<4x1xf32>
    %8 = vector.extract_strided_slice %2 {offsets = [0, 5], sizes = [16, 1], strides = [1, 1]} : vector<16x9xf32> to vector<16x1xf32>
    %9 = vector.extract_strided_slice %2 {offsets = [0, 6], sizes = [16, 1], strides = [1, 1]} : vector<16x9xf32> to vector<16x1xf32>
    %10 = vector.extract_strided_slice %2 {offsets = [0, 7], sizes = [16, 1], strides = [1, 1]} : vector<16x9xf32> to vector<16x1xf32>
    %11 = vector.extract_strided_slice %2 {offsets = [0, 8], sizes = [4, 1], strides = [1, 1]} : vector<16x9xf32> to vector<4x1xf32>
    %12 = vector.extract_strided_slice %1 {offsets = [0, 0], sizes = [4, 256], strides = [1, 1]} : vector<8x256xf32> to vector<4x256xf32>
    %cst = arith.constant dense<0.000000e+00> : vector<256xf32>
    %13 = vector.multi_reduction <add>, %12, %cst [0] : vector<4x256xf32> to vector<256xf32>
    %14 = vector.shape_cast %13 : vector<256xf32> to vector<1x256xf32>
    %cst_4 = arith.constant 4.000000e+00 : f32
    %15 = vector.broadcast %cst_4 : f32 to vector<1x256xf32>
    %16 = arith.divf %14, %15 : vector<1x256xf32>
    %17 = vector.broadcast %16 : vector<1x256xf32> to vector<4x256xf32>
    %18 = arith.subf %12, %17 : vector<4x256xf32>
    %19 = arith.mulf %18, %18 : vector<4x256xf32>
    %cst_5 = arith.constant dense<0.000000e+00> : vector<256xf32>
    %20 = vector.multi_reduction <add>, %19, %cst_5 [0] : vector<4x256xf32> to vector<256xf32>
    %21 = vector.shape_cast %20 : vector<256xf32> to vector<1x256xf32>
    %cst_6 = arith.constant 4.000000e+00 : f32
    %22 = vector.broadcast %cst_6 : f32 to vector<1x256xf32>
    %23 = arith.divf %21, %22 : vector<1x256xf32>
    %24 = vector.broadcast %16 : vector<1x256xf32> to vector<8x256xf32>
    %25 = arith.subf %1, %24 : vector<8x256xf32>
    %cst_7 = arith.constant 9.99999997E-7 : f32
    %26 = vector.broadcast %cst_7 : f32 to vector<1x256xf32>
    %27 = arith.addf %23, %26 : vector<1x256xf32>
    %28 = math.rsqrt %27 : vector<1x256xf32>
    %29 = vector.broadcast %28 : vector<1x256xf32> to vector<8x256xf32>
    %30 = arith.mulf %25, %29 : vector<8x256xf32>
    %31 = vector.broadcast %3 : vector<8x1xf32> to vector<8x256xf32>
    %32 = arith.mulf %30, %31 : vector<8x256xf32>
    %33 = vector.broadcast %4 : vector<8x1xf32> to vector<8x256xf32>
    %34 = arith.addf %32, %33 : vector<8x256xf32>
    %cst_8 = arith.constant 0.707106769 : f32
    %35 = vector.broadcast %cst_8 : f32 to vector<8x256xf32>
    %36 = arith.mulf %34, %35 : vector<8x256xf32>
    %37 = math.absf %36 : vector<8x256xf32>
    %cst_9 = arith.constant 0.327591091 : f32
    %38 = vector.broadcast %cst_9 : f32 to vector<8x256xf32>
    %39 = arith.mulf %38, %37 : vector<8x256xf32>
    %cst_10 = arith.constant 1.000000e+00 : f32
    %40 = vector.broadcast %cst_10 : f32 to vector<8x256xf32>
    %41 = arith.addf %40, %39 : vector<8x256xf32>
    %42 = tpu.reciprocal %41 {approx = true} : vector<8x256xf32> -> vector<8x256xf32>
    %43 = arith.mulf %41, %42 : vector<8x256xf32>
    %cst_11 = arith.constant 2.000000e+00 : f32
    %44 = vector.broadcast %cst_11 : f32 to vector<8x256xf32>
    %45 = arith.subf %44, %43 : vector<8x256xf32>
    %46 = arith.mulf %42, %45 : vector<8x256xf32>
    %cst_12 = arith.constant 1.06140542 : f32
    %47 = vector.broadcast %cst_12 : f32 to vector<8x256xf32>
    %48 = arith.mulf %47, %46 : vector<8x256xf32>
    %cst_13 = arith.constant -1.45315206 : f32
    %49 = vector.broadcast %cst_13 : f32 to vector<8x256xf32>
    %50 = arith.addf %48, %49 : vector<8x256xf32>
    %51 = arith.mulf %50, %46 : vector<8x256xf32>
    %cst_14 = arith.constant 1.42141378 : f32
    %52 = vector.broadcast %cst_14 : f32 to vector<8x256xf32>
    %53 = arith.addf %51, %52 : vector<8x256xf32>
    %54 = arith.mulf %53, %46 : vector<8x256xf32>
    %cst_15 = arith.constant -0.284496725 : f32
    %55 = vector.broadcast %cst_15 : f32 to vector<8x256xf32>
    %56 = arith.addf %54, %55 : vector<8x256xf32>
    %57 = arith.mulf %56, %46 : vector<8x256xf32>
    %cst_16 = arith.constant 0.254829586 : f32
    %58 = vector.broadcast %cst_16 : f32 to vector<8x256xf32>
    %59 = arith.addf %57, %58 : vector<8x256xf32>
    %60 = arith.mulf %59, %46 : vector<8x256xf32>
    %cst_17 = arith.constant 0.000000e+00 : f32
    %61 = vector.broadcast %cst_17 : f32 to vector<8x256xf32>
    %62 = arith.subf %61, %37 : vector<8x256xf32>
    %63 = arith.mulf %62, %37 : vector<8x256xf32>
    %64 = math.exp %63 : vector<8x256xf32>
    %65 = arith.mulf %60, %64 : vector<8x256xf32>
    %cst_18 = arith.constant 1.000000e+00 : f32
    %66 = vector.broadcast %cst_18 : f32 to vector<8x256xf32>
    %67 = arith.subf %66, %65 : vector<8x256xf32>
    %cst_19 = arith.constant 0.000000e+00 : f32
    %68 = vector.broadcast %cst_19 : f32 to vector<8x256xf32>
    %69 = arith.cmpf oge, %36, %68 : vector<8x256xf32>
    %cst_20 = arith.constant 0.000000e+00 : f32
    %70 = vector.broadcast %cst_20 : f32 to vector<8x256xf32>
    %71 = arith.subf %70, %67 : vector<8x256xf32>
    %72 = arith.select %69, %67, %71 : vector<8x256xi1>, vector<8x256xf32>
    %cst_21 = arith.constant 5.000000e-01 : f32
    %73 = vector.broadcast %cst_21 : f32 to vector<8x256xf32>
    %74 = arith.mulf %73, %34 : vector<8x256xf32>
    %cst_22 = arith.constant 1.000000e+00 : f32
    %75 = vector.broadcast %cst_22 : f32 to vector<8x256xf32>
    %76 = arith.addf %75, %72 : vector<8x256xf32>
    %77 = arith.mulf %74, %76 : vector<8x256xf32>
    %c17_i32 = arith.constant 17 : i32
    %78 = tpu.dynamic_rotate %77 by %c17_i32 dim 1 : vector<8x256xf32>, i32 -> vector<8x256xf32>
    %c0_23 = arith.constant 0 : index
    %c0_24 = arith.constant 0 : index
    %c0_25 = arith.constant 0 : index
    %79 = vector.load %arg3[%c0_23, %c0_24, %c0_25] : memref<9x1x256xf32, #tpu.memory_space<vmem>>, vector<1x1x256xf32>
    %80 = vector.shape_cast %79 : vector<1x1x256xf32> to vector<1x256xf32>
    %81 = vector.broadcast %80 : vector<1x256xf32> to vector<8x256xf32>
    %82 = arith.mulf %78, %81 : vector<8x256xf32>
    %c16_i32 = arith.constant 16 : i32
    %83 = tpu.dynamic_rotate %77 by %c16_i32 dim 1 : vector<8x256xf32>, i32 -> vector<8x256xf32>
    %c1 = arith.constant 1 : index
    %c0_26 = arith.constant 0 : index
    %c0_27 = arith.constant 0 : index
    %84 = vector.load %arg3[%c1, %c0_26, %c0_27] : memref<9x1x256xf32, #tpu.memory_space<vmem>>, vector<1x1x256xf32>
    %85 = vector.shape_cast %84 : vector<1x1x256xf32> to vector<1x256xf32>
    %86 = vector.broadcast %85 : vector<1x256xf32> to vector<8x256xf32>
    %87 = arith.mulf %83, %86 : vector<8x256xf32>
    %c15_i32 = arith.constant 15 : i32
    %88 = tpu.dynamic_rotate %77 by %c15_i32 dim 1 : vector<8x256xf32>, i32 -> vector<8x256xf32>
    %c2 = arith.constant 2 : index
    %c0_28 = arith.constant 0 : index
    %c0_29 = arith.constant 0 : index
    %89 = vector.load %arg3[%c2, %c0_28, %c0_29] : memref<9x1x256xf32, #tpu.memory_space<vmem>>, vector<1x1x256xf32>
    %90 = vector.shape_cast %89 : vector<1x1x256xf32> to vector<1x256xf32>
    %91 = vector.broadcast %90 : vector<1x256xf32> to vector<8x256xf32>
    %92 = arith.mulf %88, %91 : vector<8x256xf32>
    %c1_i32 = arith.constant 1 : i32
    %93 = tpu.dynamic_rotate %77 by %c1_i32 dim 1 : vector<8x256xf32>, i32 -> vector<8x256xf32>
    %c3 = arith.constant 3 : index
    %c0_30 = arith.constant 0 : index
    %c0_31 = arith.constant 0 : index
    %94 = vector.load %arg3[%c3, %c0_30, %c0_31] : memref<9x1x256xf32, #tpu.memory_space<vmem>>, vector<1x1x256xf32>
    %95 = vector.shape_cast %94 : vector<1x1x256xf32> to vector<1x256xf32>
    %96 = vector.broadcast %95 : vector<1x256xf32> to vector<8x256xf32>
    %97 = arith.mulf %93, %96 : vector<8x256xf32>
    %c255_i32 = arith.constant 255 : i32
    %98 = tpu.dynamic_rotate %77 by %c255_i32 dim 1 : vector<8x256xf32>, i32 -> vector<8x256xf32>
    %c5 = arith.constant 5 : index
    %c0_32 = arith.constant 0 : index
    %c0_33 = arith.constant 0 : index
    %99 = vector.load %arg3[%c5, %c0_32, %c0_33] : memref<9x1x256xf32, #tpu.memory_space<vmem>>, vector<1x1x256xf32>
    %100 = vector.shape_cast %99 : vector<1x1x256xf32> to vector<1x256xf32>
    %101 = vector.broadcast %100 : vector<1x256xf32> to vector<8x256xf32>
    %102 = arith.mulf %98, %101 : vector<8x256xf32>
    %c241_i32 = arith.constant 241 : i32
    %103 = tpu.dynamic_rotate %77 by %c241_i32 dim 1 : vector<8x256xf32>, i32 -> vector<8x256xf32>
    %c6 = arith.constant 6 : index
    %c0_34 = arith.constant 0 : index
    %c0_35 = arith.constant 0 : index
    %104 = vector.load %arg3[%c6, %c0_34, %c0_35] : memref<9x1x256xf32, #tpu.memory_space<vmem>>, vector<1x1x256xf32>
    %105 = vector.shape_cast %104 : vector<1x1x256xf32> to vector<1x256xf32>
    %106 = vector.broadcast %105 : vector<1x256xf32> to vector<8x256xf32>
    %107 = arith.mulf %103, %106 : vector<8x256xf32>
    %c240_i32 = arith.constant 240 : i32
    %108 = tpu.dynamic_rotate %77 by %c240_i32 dim 1 : vector<8x256xf32>, i32 -> vector<8x256xf32>
    %c7 = arith.constant 7 : index
    %c0_36 = arith.constant 0 : index
    %c0_37 = arith.constant 0 : index
    %109 = vector.load %arg3[%c7, %c0_36, %c0_37] : memref<9x1x256xf32, #tpu.memory_space<vmem>>, vector<1x1x256xf32>
    %110 = vector.shape_cast %109 : vector<1x1x256xf32> to vector<1x256xf32>
    %111 = vector.broadcast %110 : vector<1x256xf32> to vector<8x256xf32>
    %112 = arith.mulf %108, %111 : vector<8x256xf32>
    %c239_i32 = arith.constant 239 : i32
    %113 = tpu.dynamic_rotate %77 by %c239_i32 dim 1 : vector<8x256xf32>, i32 -> vector<8x256xf32>
    %c8 = arith.constant 8 : index
    %c0_38 = arith.constant 0 : index
    %c0_39 = arith.constant 0 : index
    %114 = vector.load %arg3[%c8, %c0_38, %c0_39] : memref<9x1x256xf32, #tpu.memory_space<vmem>>, vector<1x1x256xf32>
    %115 = vector.shape_cast %114 : vector<1x1x256xf32> to vector<1x256xf32>
    %116 = vector.broadcast %115 : vector<1x256xf32> to vector<8x256xf32>
    %117 = arith.mulf %113, %116 : vector<8x256xf32>
    %118 = tpu.concatenate %82, %87, %92, %97, %77, %102, %107, %112, %117 in 0 : vector<8x256xf32>, vector<8x256xf32>, vector<8x256xf32>, vector<8x256xf32>, vector<8x256xf32>, vector<8x256xf32>, vector<8x256xf32>, vector<8x256xf32>, vector<8x256xf32> -> vector<72x256xf32>
    %c0_40 = arith.constant 0 : index
    %c0_41 = arith.constant 0 : index
    %119 = vector.load %arg4[%c0_40, %c0_41] : memref<4x72xbf16, #tpu.memory_space<vmem>>, vector<4x72xbf16>
    %120 = arith.truncf %118 : vector<72x256xf32> to vector<72x256xbf16>
    %cst_42 = arith.constant dense<0.000000e+00> : vector<4x256xf32>
    %121 = tpu.matmul %119, %120, %cst_42 {dimension_numbers = #tpu.dot_dimension_numbers<[1], [0], [0], [1], [0, 0, 1, 1], [], []>} : vector<4x72xbf16>, vector<72x256xbf16>, vector<4x256xf32> -> vector<4x256xf32>
    %122 = vector.broadcast %5 : vector<4x1xf32> to vector<4x256xf32>
    %123 = arith.addf %121, %122 : vector<4x256xf32>
    %cst_43 = arith.constant dense<0.000000e+00> : vector<256xf32>
    %124 = vector.multi_reduction <add>, %123, %cst_43 [0] : vector<4x256xf32> to vector<256xf32>
    %125 = vector.shape_cast %124 : vector<256xf32> to vector<1x256xf32>
    %cst_44 = arith.constant 4.000000e+00 : f32
    %126 = vector.broadcast %cst_44 : f32 to vector<1x256xf32>
    %127 = arith.divf %125, %126 : vector<1x256xf32>
    %128 = vector.broadcast %127 : vector<1x256xf32> to vector<4x256xf32>
    %129 = arith.subf %123, %128 : vector<4x256xf32>
    %130 = arith.mulf %129, %129 : vector<4x256xf32>
    %cst_45 = arith.constant dense<0.000000e+00> : vector<256xf32>
    %131 = vector.multi_reduction <add>, %130, %cst_45 [0] : vector<4x256xf32> to vector<256xf32>
    %132 = vector.shape_cast %131 : vector<256xf32> to vector<1x256xf32>
    %cst_46 = arith.constant 4.000000e+00 : f32
    %133 = vector.broadcast %cst_46 : f32 to vector<1x256xf32>
    %134 = arith.divf %132, %133 : vector<1x256xf32>
    %135 = vector.broadcast %127 : vector<1x256xf32> to vector<4x256xf32>
    %136 = arith.subf %123, %135 : vector<4x256xf32>
    %cst_47 = arith.constant 9.99999997E-7 : f32
    %137 = vector.broadcast %cst_47 : f32 to vector<1x256xf32>
    %138 = arith.addf %134, %137 : vector<1x256xf32>
    %139 = math.rsqrt %138 : vector<1x256xf32>
    %140 = vector.broadcast %139 : vector<1x256xf32> to vector<4x256xf32>
    %141 = arith.mulf %136, %140 : vector<4x256xf32>
    %142 = vector.broadcast %6 : vector<4x1xf32> to vector<4x256xf32>
    %143 = arith.mulf %141, %142 : vector<4x256xf32>
    %144 = vector.broadcast %7 : vector<4x1xf32> to vector<4x256xf32>
    %145 = arith.addf %143, %144 : vector<4x256xf32>
    %cst_48 = arith.constant 0.707106769 : f32
    %146 = vector.broadcast %cst_48 : f32 to vector<4x256xf32>
    %147 = arith.mulf %145, %146 : vector<4x256xf32>
    %148 = math.absf %147 : vector<4x256xf32>
    %cst_49 = arith.constant 0.327591091 : f32
    %149 = vector.broadcast %cst_49 : f32 to vector<4x256xf32>
    %150 = arith.mulf %149, %148 : vector<4x256xf32>
    %cst_50 = arith.constant 1.000000e+00 : f32
    %151 = vector.broadcast %cst_50 : f32 to vector<4x256xf32>
    %152 = arith.addf %151, %150 : vector<4x256xf32>
    %153 = tpu.reciprocal %152 {approx = true} : vector<4x256xf32> -> vector<4x256xf32>
    %154 = arith.mulf %152, %153 : vector<4x256xf32>
    %cst_51 = arith.constant 2.000000e+00 : f32
    %155 = vector.broadcast %cst_51 : f32 to vector<4x256xf32>
    %156 = arith.subf %155, %154 : vector<4x256xf32>
    %157 = arith.mulf %153, %156 : vector<4x256xf32>
    %cst_52 = arith.constant 1.06140542 : f32
    %158 = vector.broadcast %cst_52 : f32 to vector<4x256xf32>
    %159 = arith.mulf %158, %157 : vector<4x256xf32>
    %cst_53 = arith.constant -1.45315206 : f32
    %160 = vector.broadcast %cst_53 : f32 to vector<4x256xf32>
    %161 = arith.addf %159, %160 : vector<4x256xf32>
    %162 = arith.mulf %161, %157 : vector<4x256xf32>
    %cst_54 = arith.constant 1.42141378 : f32
    %163 = vector.broadcast %cst_54 : f32 to vector<4x256xf32>
    %164 = arith.addf %162, %163 : vector<4x256xf32>
    %165 = arith.mulf %164, %157 : vector<4x256xf32>
    %cst_55 = arith.constant -0.284496725 : f32
    %166 = vector.broadcast %cst_55 : f32 to vector<4x256xf32>
    %167 = arith.addf %165, %166 : vector<4x256xf32>
    %168 = arith.mulf %167, %157 : vector<4x256xf32>
    %cst_56 = arith.constant 0.254829586 : f32
    %169 = vector.broadcast %cst_56 : f32 to vector<4x256xf32>
    %170 = arith.addf %168, %169 : vector<4x256xf32>
    %171 = arith.mulf %170, %157 : vector<4x256xf32>
    %cst_57 = arith.constant 0.000000e+00 : f32
    %172 = vector.broadcast %cst_57 : f32 to vector<4x256xf32>
    %173 = arith.subf %172, %148 : vector<4x256xf32>
    %174 = arith.mulf %173, %148 : vector<4x256xf32>
    %175 = math.exp %174 : vector<4x256xf32>
    %176 = arith.mulf %171, %175 : vector<4x256xf32>
    %cst_58 = arith.constant 1.000000e+00 : f32
    %177 = vector.broadcast %cst_58 : f32 to vector<4x256xf32>
    %178 = arith.subf %177, %176 : vector<4x256xf32>
    %cst_59 = arith.constant 0.000000e+00 : f32
    %179 = vector.broadcast %cst_59 : f32 to vector<4x256xf32>
    %180 = arith.cmpf oge, %147, %179 : vector<4x256xf32>
    %cst_60 = arith.constant 0.000000e+00 : f32
    %181 = vector.broadcast %cst_60 : f32 to vector<4x256xf32>
    %182 = arith.subf %181, %178 : vector<4x256xf32>
    %183 = arith.select %180, %178, %182 : vector<4x256xi1>, vector<4x256xf32>
    %cst_61 = arith.constant 5.000000e-01 : f32
    %184 = vector.broadcast %cst_61 : f32 to vector<4x256xf32>
    %185 = arith.mulf %184, %145 : vector<4x256xf32>
    %cst_62 = arith.constant 1.000000e+00 : f32
    %186 = vector.broadcast %cst_62 : f32 to vector<4x256xf32>
    %187 = arith.addf %186, %183 : vector<4x256xf32>
    %188 = arith.mulf %185, %187 : vector<4x256xf32>
    %c0_63 = arith.constant 0 : index
    %c0_64 = arith.constant 0 : index
    %189 = vector.load %arg5[%c0_63, %c0_64] : memref<16x4xbf16, #tpu.memory_space<vmem>>, vector<16x4xbf16>
    %190 = arith.truncf %188 : vector<4x256xf32> to vector<4x256xbf16>
    %cst_65 = arith.constant dense<0.000000e+00> : vector<16x256xf32>
    %191 = tpu.matmul %189, %190, %cst_65 {dimension_numbers = #tpu.dot_dimension_numbers<[1], [0], [0], [1], [0, 0, 1, 1], [], []>} : vector<16x4xbf16>, vector<4x256xbf16>, vector<16x256xf32> -> vector<16x256xf32>
    %192 = vector.broadcast %8 : vector<16x1xf32> to vector<16x256xf32>
    %193 = arith.addf %191, %192 : vector<16x256xf32>
    %cst_66 = arith.constant dense<0.000000e+00> : vector<256xf32>
    %194 = vector.multi_reduction <add>, %193, %cst_66 [0] : vector<16x256xf32> to vector<256xf32>
    %195 = vector.shape_cast %194 : vector<256xf32> to vector<1x256xf32>
    %cst_67 = arith.constant 1.600000e+01 : f32
    %196 = vector.broadcast %cst_67 : f32 to vector<1x256xf32>
    %197 = arith.divf %195, %196 : vector<1x256xf32>
    %198 = vector.broadcast %197 : vector<1x256xf32> to vector<16x256xf32>
    %199 = arith.subf %193, %198 : vector<16x256xf32>
    %200 = arith.mulf %199, %199 : vector<16x256xf32>
    %cst_68 = arith.constant dense<0.000000e+00> : vector<256xf32>
    %201 = vector.multi_reduction <add>, %200, %cst_68 [0] : vector<16x256xf32> to vector<256xf32>
    %202 = vector.shape_cast %201 : vector<256xf32> to vector<1x256xf32>
    %cst_69 = arith.constant 1.600000e+01 : f32
    %203 = vector.broadcast %cst_69 : f32 to vector<1x256xf32>
    %204 = arith.divf %202, %203 : vector<1x256xf32>
    %205 = vector.broadcast %197 : vector<1x256xf32> to vector<16x256xf32>
    %206 = arith.subf %193, %205 : vector<16x256xf32>
    %cst_70 = arith.constant 9.99999997E-7 : f32
    %207 = vector.broadcast %cst_70 : f32 to vector<1x256xf32>
    %208 = arith.addf %204, %207 : vector<1x256xf32>
    %209 = math.rsqrt %208 : vector<1x256xf32>
    %210 = vector.broadcast %209 : vector<1x256xf32> to vector<16x256xf32>
    %211 = arith.mulf %206, %210 : vector<16x256xf32>
    %212 = vector.broadcast %9 : vector<16x1xf32> to vector<16x256xf32>
    %213 = arith.mulf %211, %212 : vector<16x256xf32>
    %214 = vector.broadcast %10 : vector<16x1xf32> to vector<16x256xf32>
    %215 = arith.addf %213, %214 : vector<16x256xf32>
    %cst_71 = arith.constant 0.707106769 : f32
    %216 = vector.broadcast %cst_71 : f32 to vector<16x256xf32>
    %217 = arith.mulf %215, %216 : vector<16x256xf32>
    %218 = math.absf %217 : vector<16x256xf32>
    %cst_72 = arith.constant 0.327591091 : f32
    %219 = vector.broadcast %cst_72 : f32 to vector<16x256xf32>
    %220 = arith.mulf %219, %218 : vector<16x256xf32>
    %cst_73 = arith.constant 1.000000e+00 : f32
    %221 = vector.broadcast %cst_73 : f32 to vector<16x256xf32>
    %222 = arith.addf %221, %220 : vector<16x256xf32>
    %223 = tpu.reciprocal %222 {approx = true} : vector<16x256xf32> -> vector<16x256xf32>
    %224 = arith.mulf %222, %223 : vector<16x256xf32>
    %cst_74 = arith.constant 2.000000e+00 : f32
    %225 = vector.broadcast %cst_74 : f32 to vector<16x256xf32>
    %226 = arith.subf %225, %224 : vector<16x256xf32>
    %227 = arith.mulf %223, %226 : vector<16x256xf32>
    %cst_75 = arith.constant 1.06140542 : f32
    %228 = vector.broadcast %cst_75 : f32 to vector<16x256xf32>
    %229 = arith.mulf %228, %227 : vector<16x256xf32>
    %cst_76 = arith.constant -1.45315206 : f32
    %230 = vector.broadcast %cst_76 : f32 to vector<16x256xf32>
    %231 = arith.addf %229, %230 : vector<16x256xf32>
    %232 = arith.mulf %231, %227 : vector<16x256xf32>
    %cst_77 = arith.constant 1.42141378 : f32
    %233 = vector.broadcast %cst_77 : f32 to vector<16x256xf32>
    %234 = arith.addf %232, %233 : vector<16x256xf32>
    %235 = arith.mulf %234, %227 : vector<16x256xf32>
    %cst_78 = arith.constant -0.284496725 : f32
    %236 = vector.broadcast %cst_78 : f32 to vector<16x256xf32>
    %237 = arith.addf %235, %236 : vector<16x256xf32>
    %238 = arith.mulf %237, %227 : vector<16x256xf32>
    %cst_79 = arith.constant 0.254829586 : f32
    %239 = vector.broadcast %cst_79 : f32 to vector<16x256xf32>
    %240 = arith.addf %238, %239 : vector<16x256xf32>
    %241 = arith.mulf %240, %227 : vector<16x256xf32>
    %cst_80 = arith.constant 0.000000e+00 : f32
    %242 = vector.broadcast %cst_80 : f32 to vector<16x256xf32>
    %243 = arith.subf %242, %218 : vector<16x256xf32>
    %244 = arith.mulf %243, %218 : vector<16x256xf32>
    %245 = math.exp %244 : vector<16x256xf32>
    %246 = arith.mulf %241, %245 : vector<16x256xf32>
    %cst_81 = arith.constant 1.000000e+00 : f32
    %247 = vector.broadcast %cst_81 : f32 to vector<16x256xf32>
    %248 = arith.subf %247, %246 : vector<16x256xf32>
    %cst_82 = arith.constant 0.000000e+00 : f32
    %249 = vector.broadcast %cst_82 : f32 to vector<16x256xf32>
    %250 = arith.cmpf oge, %217, %249 : vector<16x256xf32>
    %cst_83 = arith.constant 0.000000e+00 : f32
    %251 = vector.broadcast %cst_83 : f32 to vector<16x256xf32>
    %252 = arith.subf %251, %248 : vector<16x256xf32>
    %253 = arith.select %250, %248, %252 : vector<16x256xi1>, vector<16x256xf32>
    %cst_84 = arith.constant 5.000000e-01 : f32
    %254 = vector.broadcast %cst_84 : f32 to vector<16x256xf32>
    %255 = arith.mulf %254, %215 : vector<16x256xf32>
    %cst_85 = arith.constant 1.000000e+00 : f32
    %256 = vector.broadcast %cst_85 : f32 to vector<16x256xf32>
    %257 = arith.addf %256, %253 : vector<16x256xf32>
    %258 = arith.mulf %255, %257 : vector<16x256xf32>
    %c0_86 = arith.constant 0 : index
    %c0_87 = arith.constant 0 : index
    %259 = vector.load %arg6[%c0_86, %c0_87] : memref<4x16xbf16, #tpu.memory_space<vmem>>, vector<4x16xbf16>
    %260 = arith.truncf %258 : vector<16x256xf32> to vector<16x256xbf16>
    %cst_88 = arith.constant dense<0.000000e+00> : vector<4x256xf32>
    %261 = tpu.matmul %259, %260, %cst_88 {dimension_numbers = #tpu.dot_dimension_numbers<[1], [0], [0], [1], [0, 0, 1, 1], [], []>} : vector<4x16xbf16>, vector<16x256xbf16>, vector<4x256xf32> -> vector<4x256xf32>
    %262 = vector.broadcast %11 : vector<4x1xf32> to vector<4x256xf32>
    %263 = arith.addf %261, %262 : vector<4x256xf32>
    %c0_89 = arith.constant 0 : index
    %c0_90 = arith.constant 0 : index
    %c0_91 = arith.constant 0 : index
    %264 = vector.load %arg7[%c0_89, %c0_90, %c0_91] : memref<1x4x256xf32, #tpu.memory_space<vmem>>, vector<1x4x256xf32>
    %265 = vector.shape_cast %264 : vector<1x4x256xf32> to vector<4x256xf32>
    %266 = vector.shape_cast %263 : vector<4x256xf32> to vector<1x4x256xf32>
    tpu.vector_store %arg7[%c0_89, %c0_90, %c0_91], %266 {strides = array<i32>} : memref<1x4x256xf32, #tpu.memory_space<vmem>>, vector<1x4x256xf32>,
    return
  }
  func.func @transform_0(%arg0: i32) -> (i32, i32, i32) {
    %c0_i32 = arith.constant 0 : i32
    %c0_i32_0 = arith.constant 0 : i32
    %c0_i32_1 = arith.constant 0 : i32
    return %arg0, %c0_i32, %c0_i32_0 : i32, i32, i32
  }
  func.func @transform_1(%arg0: i32) -> (i32, i32) {
    %c0_i32 = arith.constant 0 : i32
    %c0_i32_0 = arith.constant 0 : i32
    %c0_i32_1 = arith.constant 0 : i32
    return %c0_i32, %c0_i32_0 : i32, i32
  }
  func.func @transform_2(%arg0: i32) -> (i32, i32, i32) {
    %c0_i32 = arith.constant 0 : i32
    %c0_i32_0 = arith.constant 0 : i32
    %c0_i32_1 = arith.constant 0 : i32
    %c0_i32_2 = arith.constant 0 : i32
    return %c0_i32, %c0_i32_0, %c0_i32_1 : i32, i32, i32
  }
  func.func @transform_3(%arg0: i32) -> (i32, i32) {
    %c0_i32 = arith.constant 0 : i32
    %c0_i32_0 = arith.constant 0 : i32
    %c0_i32_1 = arith.constant 0 : i32
    return %c0_i32, %c0_i32_0 : i32, i32
  }
  func.func @transform_4(%arg0: i32) -> (i32, i32) {
    %c0_i32 = arith.constant 0 : i32
    %c0_i32_0 = arith.constant 0 : i32
    %c0_i32_1 = arith.constant 0 : i32
    return %c0_i32, %c0_i32_0 : i32, i32
  }
  func.func @transform_5(%arg0: i32) -> (i32, i32) {
    %c0_i32 = arith.constant 0 : i32
    %c0_i32_0 = arith.constant 0 : i32
    %c0_i32_1 = arith.constant 0 : i32
    return %c0_i32, %c0_i32_0 : i32, i32
  }
  func.func @transform_6(%arg0: i32) -> (i32, i32, i32) {
    %c0_i32 = arith.constant 0 : i32
    %c0_i32_0 = arith.constant 0 : i32
    %c0_i32_1 = arith.constant 0 : i32
    return %arg0, %c0_i32, %c0_i32_0 : i32, i32, i32
  }
}

</mosaic_0001>

<bundles_post_ra>
// kernel: tpu_custom_call.1
= control target key start
LH: loop header
LB: loop body
LE: loop exit
PB: predicated region body
PF: predicated region fallthrough
CT: control target
= control target key end

     0   :  { %s1865_s0 = inlined_call_operand.hbm [shape: f32[2,8,256], index: 0, kind: input, shape index: {}]   ;;  %s1866_s1 = inlined_call_operand.hbm [shape: f32[16,9], index: 1, kind: input, shape index: {}]   ;;  %s1867_s2 = inlined_call_operand.hbm [shape: f32[9,1,256], index: 2, kind: input, shape index: {}]   ;;  %s1868_s3 = inlined_call_operand.vmem [shape: bf16[4,72], index: 3, kind: input, shape index: {}]   ;;  %s1869_s4 = inlined_call_operand.vmem [shape: bf16[16,4], index: 4, kind: input, shape index: {}]   ;;  %s1870_s5 = inlined_call_operand.vmem [shape: bf16[4,16], index: 5, kind: input, shape index: {}]   ;;  %s1871_s6 = inlined_call_operand.hbm [shape: f32[2,4,256], index: 6, kind: output, shape index: {}]  }
   0x1   :  { %1876 = sst [smem:[#allocation12_spill]] %s1866_s1 }
   0x2   :  { %11 = vsyncpa [#allocation3], 0 }
   0x3   :  { %13 = vsyncpa [#allocation3 + $0x1], 0 }
   0x4   :  { %14 = vsyncpa [#allocation6], 0 }
   0x5   :  { %15 = vsyncpa [#allocation4], 0 }
   0x6   :  { %17 = vsyncpa [#allocation4 + $0x1], 0  ;;  %s1575_s21 = smov 0   ;;  %s1577_s22 = smov 0  }
   0x7   :  { %s1579_s23 = smov 0   ;;  %s1581_s24 = smov 0  }
   0x8 LB: > { %s1596_s25 = sadd.s32 4294967295, %s1513_s24   ;;  %s1194_s26 = sadd.s32 4294967294, %s1513_s24   ;;  %s1513_s24 = sphi %s1581_s24, %s1895_s24   ;;  %s1509_s23 = sphi %s1579_s23, %s1894_s23   ;;  %s1505_s22 = sphi %s1577_s22, %s1893_s22   ;;  %s1501_s21 = sphi %s1575_s21, %s1892_s21  }
   0x9   : > { %p43_p0 = scmp.ne.s32.totalorder %s1505_s22, %s1501_s21  ;;  %p1872_p1 = scmp.eq.s32.totalorder %s1596_s25, 0 }
   0xa   : > { %p178_p3 = scmp.eq.s32.totalorder %s1194_s26, 1  ;;  %p1195_p5 = scmp.ge.s32.totalorder %s1513_s24, 1 }
   0xb   : > { %p1605_p4 = por %p1872_p1, %p43_p0  ;;  %p185_p7 = scmp.lt.s32.totalorder %s1513_s24, 3 }
   0xc   : > { %p1610_p6 = por %p178_p3, %p43_p0  ;;  %s1515_s30 = smov [#allocation5]  }
   0xd   : > { %s1877_s27 = scalar_select %p1605_p4, 1, 0 }
   0xe   : > { %s1878_s28 = scalar_select %p1610_p6, 1, 0 }
   0xf   : > { %p1615_p8 = pnand %p1195_p5, %p185_p7  ;;  %s197_s7 = sshll.u32 %s1515_s30, 4  ;;  %s198_s7 = int_to_ptr.vmem [resolvable:$true] %s197_s7 }
  0x10   : > { %s1516_s9 = smov [#allocation7]   ;;  %s1376_s11 = scalar_lea.vmem %s198_s7, 256 }
  0x11   : > { %s1879_s29 = scalar_select %p1615_p8, 1, 0 }
  0x12   : > { %p1232_p9 = pneg %p1615_p8  ;;  %s210_s10 = sshll.u32 %s1516_s9, 4  ;;  %s211_s10 = int_to_ptr.vmem [resolvable:$true] %s210_s10 }
  0x13   : > { %p1377_p13 = scmp.ne.s32.totalorder %s198_s7, %s1376_s11  ;;  %p1384_p5 = scmp.lt.s32.totalorder %s198_s7, %s198_s7 }
  0x14   : > { %p1624_p11 = pnand %p1232_p9, %p1872_p1  ;;  %p1385_p7 = scmp.lt.s32.totalorder %s1376_s11, %s1376_s11 }
  0x16   : > { %p1367_p12 = pneg %p1624_p11  ;;  %p1386_p10 = por %p1385_p7, %p1384_p5 }
  0x18   : > { %p1379_p0 = pnand %p1377_p13, %p1367_p12 }
  0x1a   : > { %p1380_p3 = pneg %p1379_p0 }
  0x1c   : > { %p1387_p9 = pnand %p1386_p10, %p1380_p3 }
  0x1e   : > { %1390 = shalt.err (!%p1387_p9)
}
  0x1f   : > { %s1517_s12 = smov 128   ;;  %s1518_s13 = smov 8  }
  0x20   : > { %s1881_s1 = sld [smem:[#allocation12_spill]]  ;;  %s1402_s16 = scalar_lea.vmem %s211_s10, 288 }
  0x21   : > { %p1403_p1 = scmp.ne.s32.totalorder %s211_s10, %s1402_s16  ;;  %p1410_p2 = scmp.lt.s32.totalorder %s211_s10, %s211_s10 }
  0x22   : > { %p1411_p6 = scmp.lt.s32.totalorder %s1402_s16, %s1402_s16 }
  0x23   : > { %p1405_p13 = pnand %p1403_p1, %p1367_p12 }
  0x24   : > { %p1412_p5 = por %p1411_p6, %p1410_p2 }
  0x25   : > { %p1406_p0 = pneg %p1405_p13 }
  0x26   : > { %1235 = dma.hbm_to_vmem [thread:$0]  (!%p1624_p11), %s1881_s1, 256, %s198_s7, [#allocation6], %s1517_s12, %s1517_s12, %s1518_s13  }
  0x27   : > { %p1413_p10 = pnand %p1412_p5, %p1406_p0 }
  0x29   : > { %1416 = shalt.err (!%p1413_p10)
}
  0x2a   : > { %s1519_s17 = smov 32   ;;  %s1520_s18 = smov 2  }
  0x2b   : > { %1238 = dma.hbm_to_vmem [thread:$0]  (!%p1624_p11), %s1867_s2, 288, %s211_s10, [#allocation6], %s1519_s17, %s1519_s17, %s1520_s18  }
  0x2c   : > { %s1647_s26 = sadd.s32 1, %s1513_s24   ;;  %s30_s7 = sadd.s32 1, %s1509_s23 }
  0x2d   : > { %s27_s30 = ssub.s32 %s1513_s24, %s1647_s26  ;;  %p37_p2 = scmp.ne.s32.totalorder %s1509_s23, %s1505_s22 }
  0x2e   : > { %p28_p1 = scmp.eq.s32.totalorder %s27_s30, 0  ;;  %p38_p6 = scmp.eq.s32.totalorder %s1513_s24, 0 }
  0x2f   : > { %p1882_p3 = scmp.eq.s32.totalorder %s1596_s25, 1  ;;  %p1249_p9 = scmp.lt.s32.totalorder %s1513_s24, 2 }
  0x30   : > { %s1656_s9 = scalar_select %p28_p1, %s1509_s23, %s30_s7  }
  0x31   : > { %p39_p12 = por %p38_p6, %p37_p2  ;;  %p1660_p7 = por %p1882_p3, %p37_p2 }
  0x32   : > { %s233_s8 = sand.u32 1, %s1509_s23   ;;  %s1218_s10 = sshll.u32 %s1513_s24, 8 }
  0x33   : > { %s1883_s11 = scalar_select %p1660_p7, 1, 0 }
  0x34   : > { %s1199_s12 = sshll.u32 %s233_s8, 4  ;;  %s1670_s15 = scalar_lea.hbm %s1865_s0, %s1218_s10 }
  0x35   : > { %s237_s16 = scalar_lea.vmem [#allocation2], %s1199_s12  ;;  %p1672_p11 = pnand %p1249_p9, %p39_p12 }
  0x36   : > { %s245_s17 = sshll.u32 %s237_s16, 4  ;;  %s234_s19 = scalar_lea.sflag [#allocation3], %s233_s8  ;;  %s246_s17 = int_to_ptr.vmem [resolvable:$true] %s245_s17 }
  0x37   : > { %s1417_s20 = scalar_lea.hbm %s1670_s15, 256  ;;  %p1419_p0 = pneg %p1672_p11 }
  0x38   : > { %p1418_p13 = scmp.ne.s32.totalorder %s1670_s15, %s1417_s20  ;;  %s1422_s10 = scalar_lea.hbm %s1865_s0, 512 }
  0x39   : > { %p1423_p1 = scmp.lt.s32.totalorder %s1670_s15, %s1865_s0  ;;  %p1424_p2 = scmp.lt.s32.totalorder %s1422_s10, %s1417_s20 }
  0x3a   : > { %p1420_p5 = pnand %p1419_p0, %p1418_p13 }
  0x3b   : > { %p1425_p6 = por %p1424_p2, %p1423_p1 }
  0x3c   : > { %p1421_p10 = pneg %p1420_p5 }
  0x3e   : > { %p1426_p12 = pnand %p1425_p6, %p1421_p10 }
  0x40   : > { %1429 = shalt.err (!%p1426_p12)
}
  0x41   : > { %s1430_s14 = scalar_lea.vmem %s246_s17, 256  ;;  %s1521_s8 = smov [#allocation2]  }
  0x42   : > { %p1431_p3 = scmp.ne.s32.totalorder %s246_s17, %s1430_s14  ;;  %s1435_s16 = sshll.u32 %s1521_s8, 4  ;;  %s1436_s16 = int_to_ptr.vmem [resolvable:$false] %s1435_s16 }
  0x43   : > { %s1437_s1 = scalar_lea.vmem %s1436_s16, 512  ;;  %p1438_p13 = scmp.lt.s32.totalorder %s246_s17, %s1436_s16 }
  0x44   : > { %p1433_p9 = pnand %p1431_p3, %p1419_p0  ;;  %p1439_p5 = scmp.lt.s32.totalorder %s1437_s1, %s1430_s14 }
  0x46   : > { %p1434_p7 = pneg %p1433_p9  ;;  %p1440_p4 = por %p1439_p5, %p1438_p13 }
  0x48   : > { %p1441_p8 = pnand %p1440_p4, %p1434_p7 }
  0x4a   : > { %1444 = shalt.err (!%p1441_p8)
}
  0x4b   : > { %1242 = dma.hbm_to_vmem [thread:$0]  (!%p1672_p11), %s1670_s15, 256, %s246_s17, %s234_s19  }
  0x4c   : > { %p1885_p10 = scmp.ne.s32.totalorder %s1879_s29, 0 }
  0x4d   : > { %s1693_s20 = sand.u32 (!%p1885_p10), 1, %s1505_s22   ;;  %p1886_p0 = scmp.ne.s32.totalorder (!%p1885_p10), %s1877_s27, 0 }
  0x4e   : > { %254 = sbr.rel (%p1885_p10) target bundleno = 1284 (0x504), region = 44  ;;  %s1203_s30 = sshll.u32 (!%p1885_p10), %s1693_s20, 4 }
  0x4f   : > { %s257_s7 = scalar_lea.sflag (!%p1885_p10), [#allocation3], %s1693_s20  ;;  %s260_s10 = scalar_lea.vmem (!%p1885_p10), [#allocation2], %s1203_s30 }
  0x53   : > { %1488 = dma.done.wait (%p1886_p0), %s257_s7, 256  }
  0x54   : > { %1490 = vsyncadd (%p1886_p0), %s257_s7, 4294967040  ;;  %p1887_p4 = scmp.eq.s32.totalorder %s1596_s25, 0 }
  0x56   : > { %1492 = dma.done.wait (%p1887_p4), [#allocation6], 544   ;;  %p1888_p8 = pmov %p1887_p4 }
  0x57   : > { %v1522_v0 = vmov 0   ;;  %v1708_v1 = vld [vmem:[#allocation5] sm:$0xff]  ;;  %v1523_v2 = vmov 1   ;;  %vm302_vm0 = vcmask 1043456   ;;  %v299_v4 = vld [vmem:[%s260_s10 + $0x8] sm:$0xff]  ;;  %s1524_s1 = smov 111  }
  0x58   : > { %1494 = vsyncadd (%p1888_p8), [#allocation6], 4294966752  ;;  %1308 = vset.pattern.permute.xlu0 %v1522_v0  ;;  %651 = vmatprep.mubr.bf16.mxu0 %v1522_v0  ;;  %v298_v3 = vld [vmem:[%s260_s10] sm:$0xff]  ;;  %v310_v6 = vsel %vm302_vm0, %v299_v4, 0.0  ;;  %s1525_s27 = smov 113   ;;  %s1526_s29 = smov 112  }
  0x59   : > { %833 = vmatprep.mubr.bf16.mxu1 %v1522_v0  ;;  %348 = vperm.xlu0 %1308, %v1708_v1   ;;  %v303_v5 = vsel %vm302_vm0, %v298_v3, 0.0  ;;  %v311_v8 = vrot.slane %v310_v6, 4  ;;  %s1527_s15 = smov 127   ;;  %s1528_s17 = smov 15   ;;  %vm609_vm11 = vcmask 588800   ;;  %vm794_vm14 = vcmask 1041408  }
  0x5a   : > { %v304_v7 = vrot.slane %v303_v5, 4  ;;  %s1529_s18 = smov 1   ;;  %s1530_s19 = smov 17   ;;  %vm790_vm15 = vcmask 31744  }
  0x5b   : > { %v312_v10 = vadd.f32 %v311_v8, %v310_v6  ;;  %s1531_s13 = smov 16   ;;  %s1206_s10 = sshll.u32 %s1693_s20, 3 }
  0x5c   : > { %v305_v9 = vadd.f32 %v304_v7, %v303_v5  ;;  %p1889_p11 = scmp.ne.s32.totalorder %s1883_s11, 0 }
  0x5d   : > { %1309 = vset.pattern.permute.xlu0 %v1523_v2  ;;  %v313_v12 = vrot.slane %v312_v10, 2 }
  0x5e   : > { %354 = vperm.xlu0 %1309, %v1708_v1   ;;  %v306_v11 = vrot.slane %v305_v9, 2 }
  0x5f   : > { %v314_v14 = vadd.f32 %v313_v12, %v312_v10 }
  0x60   : > { %v307_v13 = vadd.f32 %v306_v11, %v305_v9 }
  0x61   : > { %v315_v16 = vrot.slane %v314_v14, 1 }
  0x62   : > { %v308_v15 = vrot.slane %v307_v13, 1 }
  0x63   : > { %v316_v18 = vadd.f32 %v315_v16, %v314_v14 }
  0x64   : > { %v309_v17 = vadd.f32 %v308_v15, %v307_v13 }
  0x65   : > { %v319_v20 = vmul.f32 0.25, %v316_v18 }
  0x66   : > { %v318_v19 = vmul.f32 0.25, %v309_v17 }
  0x67   : > { %v321_v22 = vsub.f32 %v299_v4, %v319_v20 }
  0x68   : > { %v320_v21 = vsub.f32 %v298_v3, %v318_v19 }
  0x69   : > { %v323_v24 = vmul.f32 %v321_v22, %v321_v22 }
  0x6a   : > { %v322_v23 = vmul.f32 %v320_v21, %v320_v21 }
  0x6b   : > { %v331_v26 = vsel %vm302_vm0, %v323_v24, 0.0 }
  0x6c   : > { %v324_v25 = vsel %vm302_vm0, %v322_v23, 0.0  ;;  %v332_v28 = vrot.slane %v331_v26, 4 }
  0x6d   : > { %v325_v27 = vrot.slane %v324_v25, 4 }
  0x6e   : > { %v333_v30 = vadd.f32 %v332_v28, %v331_v26 }
  0x6f   : > { %v326_v29 = vadd.f32 %v325_v27, %v324_v25 }
  0x70   : > { %v334_v32 = vrot.slane %v333_v30, 2 }
  0x71   : > { %v327_v31 = vrot.slane %v326_v29, 2 }
  0x72   : > { %v335_v34 = vadd.f32 %v334_v32, %v333_v30 }
  0x73   : > { %v328_v33 = vadd.f32 %v327_v31, %v326_v29 }
  0x74   : > { %v336_v36 = vrot.slane %v335_v34, 1 }
  0x75   : > { %v329_v35 = vrot.slane %v328_v33, 1 }
  0x76   : > { %v337_v38 = vadd.f32 %v336_v36, %v335_v34 }
  0x77   : > { %v330_v37 = vadd.f32 %v329_v35, %v328_v33 }
  0x78   : > { %v339_v40 = vmul.f32 0.25, %v337_v38 }
  0x79   : > { %v338_v39 = vmul.f32 0.25, %v330_v37 }
  0x7a   : > { %v341_v42 = vadd.f32 1e-06, %v339_v40 }
  0x7b   : > { %v340_v41 = vadd.f32 1e-06, %v338_v39 }
  0x7d   : > { %1321 = vrsqrt.f32 %v340_v41 }
  0x7e   : > { %1323 = vrsqrt.f32 %v341_v42 }
  0x8a   : > { %v1322_v43 = vpop.eup %1321 }
  0x8b   : > { %v1324_v44 = vpop.eup %1323  ;;  %v344_v46 = vmul.f32 %v1322_v43, %v320_v21 }
  0x8c   : > { %v345_v47 = vmul.f32 %v1324_v44, %v321_v22 }
  0xd4   : > { %v349_v45 = vpop.permute.xlu0 %348 }
  0xd5   : > { %v351_v48 = vmul.f32 %v349_v45, %v344_v46  ;;  %v352_v49 = vmul.f32 %v349_v45, %v345_v47  ;;  %v1532_v47 = vmov 2  }
  0xd6   : > { %1310 = vset.pattern.permute.xlu1 %v1532_v47 }
  0xd9   : > { %v355_v50 = vpop.permute.xlu0 %354 }
  0xda   : > { %v357_v51 = vadd.f32 %v355_v50, %v351_v48  ;;  %v358_v52 = vadd.f32 %v355_v50, %v352_v49  ;;  %v1533_v48 = vmov 3   ;;  %v1534_v49 = vmov 4  }
  0xdb   : > { %1311 = vset.pattern.permute.xlu0 %v1533_v48  ;;  %v421_v50 = vlaneseq }
  0xdc   : > { %v359_v53 = vmul.f32 0.70710677, %v357_v51  ;;  %v360_v54 = vmul.f32 0.70710677, %v358_v52  ;;  %v411_v41 = vmul.f32 0.5, %v357_v51  ;;  %v412_v43 = vmul.f32 0.5, %v358_v52 }
  0xdd   : > { %v429_v51 = vshrl.u32 %v421_v50, 7  ;;  %v1739_v52 = vand.u32 127, %v421_v50 }
  0xde   : > { %v361_v55 = vand.u32 2147483647, %v359_v53  ;;  %v362_v56 = vand.u32 2147483647, %v360_v54  ;;  %vm405_vm1 = vcmp.ge.f32.partialorder %v359_v53, 0.0  ;;  %vm406_vm2 = vcmp.ge.f32.partialorder %v360_v54, 0.0 }
  0xdf   : > { %v1741_v53 = vsub.s32 0, %v429_v51  ;;  %v1743_v54 = vsub.s32 1, %v429_v51  ;;  %vm576_vm3 = vcmp.lt.s32.totalorder %v1739_v52, 111  ;;  %vm532_vm4 = vcmp.lt.s32.totalorder %v1739_v52, 113 }
  0xe0   : > { %v363_v57 = vmul.f32 0.3275911, %v361_v55  ;;  %v364_v58 = vmul.f32 0.3275911, %v362_v56  ;;  %v393_v61 = vsub.f32 0.0, %v361_v55  ;;  %v394_v63 = vsub.f32 0.0, %v362_v56 }
  0xe1   : > { %vm554_vm5 = vcmp.lt.s32.totalorder %v1739_v52, 112  ;;  %vm510_vm6 = vcmp.lt.s32.totalorder %v1739_v52, 127  ;;  %vm466_vm7 = vcmp.lt.s32.totalorder %v1739_v52, 15  ;;  %vm488_vm8 = vcmp.lt.s32.totalorder %v1739_v52, 1 }
  0xe2   : > { %v365_v59 = vadd.f32 1.0, %v363_v57  ;;  %v366_v60 = vadd.f32 1.0, %v364_v58  ;;  %v395_v6 = vmul.f32 %v393_v61, %v361_v55  ;;  %v396_v8 = vmul.f32 %v394_v63, %v362_v56  ;;  %v580_v55 = vld [vmem:[#allocation7 + $0x10] sm:$0x3] }
  0xe3   : > { %v585_v58 = vrot.slane %v580_v55, %v1741_v53  ;;  %vm423_vm9 = vcmp.lt.s32.totalorder %v1739_v52, 17  ;;  %vm444_vm10 = vcmp.lt.s32.totalorder %v1739_v52, 16  ;;  %v594_v52 = vld [vmem:[%s1868_s3] sm:$0x3] }
  0xe4   : > { %1325 = vrcp.f32 %v365_v59  ;;  %v397_v12 = vmul.f32 1.442695, %v395_v6  ;;  %v399_v14 = vmul.f32 1.442695, %v396_v8 }
  0xe5   : > { %1327 = vrcp.f32 %v366_v60 }
  0xe6   : > { %1329 = vpow2.f32 %v397_v12 }
  0xe7   : > { %1331 = vpow2.f32 %v399_v14 }
  0xf1   : > { %v1326_v62 = vpop.eup %1325 }
  0xf2   : > { %v1328_v2 = vpop.eup %1327  ;;  %v369_v3 = vmul.f32 %v1326_v62, %v365_v59  ;;  %v589_v59 = vrot.slane %v580_v55, %v1743_v54 }
  0xf3   : > { %v370_v4 = vmul.f32 %v1328_v2, %v366_v60  ;;  %v1330_v30 = vpop.eup %1329 }
  0xf4   : > { %v371_v5 = vsub.f32 2.0, %v369_v3  ;;  %v1332_v32 = vpop.eup %1331  ;;  %v536_v3 = vld [vmem:[#allocation7 + $0xc] sm:$0x3] }
  0xf5   : > { %v372_v7 = vsub.f32 2.0, %v370_v4 }
  0xf6   : > { %v373_v9 = vmul.f32 %v1326_v62, %v371_v5  ;;  %v558_v5 = vld [vmem:[#allocation7 + $0xe] sm:$0x3] }
  0xf7   : > { %v374_v10 = vmul.f32 %v1328_v2, %v372_v7  ;;  %v567_v14 = vrot.slane %v558_v5, %v1743_v54 }
  0xf8   : > { %v375_v11 = vmul.f32 1.0614054, %v373_v9 }
  0xf9   : > { %v376_v13 = vmul.f32 1.0614054, %v374_v10 }
  0xfa   : > { %v377_v15 = vadd.f32 -1.4531521, %v375_v11  ;;  %v545_v11 = vrot.slane %v536_v3, %v1743_v54 }
  0xfb   : > { %v378_v16 = vadd.f32 -1.4531521, %v376_v13  ;;  %v563_v13 = vrot.slane %v558_v5, %v1741_v53 }
  0xfc   : > { %v379_v17 = vmul.f32 %v377_v15, %v373_v9  ;;  %v514_v15 = vld [vmem:[#allocation7 + $0xa] sm:$0x3] }
  0xfd   : > { %v380_v18 = vmul.f32 %v378_v16, %v374_v10 }
  0xfe   : > { %v381_v19 = vadd.f32 1.4214138, %v379_v17 }
  0xff   : > { %v382_v20 = vadd.f32 1.4214138, %v380_v18 }
 0x100   : > { %v383_v21 = vmul.f32 %v381_v19, %v373_v9 }
 0x101   : > { %v384_v22 = vmul.f32 %v382_v20, %v374_v10 }
 0x102   : > { %v385_v23 = vadd.f32 -0.28449672, %v383_v21  ;;  %v519_v21 = vrot.slane %v514_v15, %v1741_v53 }
 0x103   : > { %v386_v24 = vadd.f32 -0.28449672, %v384_v22  ;;  %v523_v22 = vrot.slane %v514_v15, %v1743_v54 }
 0x104   : > { %v387_v25 = vmul.f32 %v385_v23, %v373_v9 }
 0x105   : > { %v388_v26 = vmul.f32 %v386_v24, %v374_v10 }
 0x106   : > { %v389_v27 = vadd.f32 0.2548296, %v387_v25 }
 0x107   : > { %v390_v28 = vadd.f32 0.2548296, %v388_v26 }
 0x108   : > { %v391_v29 = vmul.f32 %v389_v27, %v373_v9 }
 0x109   : > { %v392_v31 = vmul.f32 %v390_v28, %v374_v10  ;;  %v541_v10 = vrot.slane %v536_v3, %v1741_v53 }
 0x10a   : > { %v401_v33 = vmul.f32 %v1330_v30, %v391_v29 }
 0x10b   : > { %v402_v34 = vmul.f32 %v1332_v32, %v392_v31 }
 0x10c   : > { %v403_v35 = vsub.f32 1.0, %v401_v33 }
 0x10d   : > { %v404_v36 = vsub.f32 1.0, %v402_v34 }
 0x10e   : > { %v407_v37 = vsub.f32 0.0, %v403_v35 }
 0x10f   : > { %v408_v38 = vsub.f32 0.0, %v404_v36 }
 0x110   : > { %v409_v39 = vsel %vm405_vm1, %v403_v35, %v407_v37  ;;  %v470_v35 = vld [vmem:[#allocation7 + $0x4] sm:$0x3] }
 0x111   : > { %v410_v40 = vsel %vm406_vm2, %v404_v36, %v408_v38  ;;  %v413_v42 = vadd.f32 1.0, %v409_v39  ;;  %v492_v36 = vld [vmem:[#allocation7 + $0x6] sm:$0x3] }
 0x112   : > { %v414_v44 = vadd.f32 1.0, %v410_v40 }
 0x113   : > { %v1716_v45 = vmul.f32 %v413_v42, %v411_v41  ;;  %v475_v41 = vrot.slane %v470_v35, %v1741_v53  ;;  %v479_v42 = vrot.slane %v470_v35, %v1743_v54 }
 0x114   : > { %v1718_v46 = vmul.f32 %v414_v44, %v412_v43  ;;  %v497_v43 = vrot.slane %v492_v36, %v1741_v53  ;;  %v501_v44 = vrot.slane %v492_v36, %v1743_v54 }
 0x115   : > { %572 = vrot.lane.b32.xlu1 %v1716_v45, %s1524_s1 }
 0x116   : > { %530 = vrot.lane.b32.xlu0 %v1718_v46, %s1525_s27 }
 0x119   : > { %574 = vrot.lane.b32.xlu1 %v1718_v46, %s1524_s1  ;;  %s1219_s1 = sshll.u32 %s1596_s25, 7  ;;  %s1539_s25 = smov [#allocation8]  }
 0x11a   : > { %552 = vrot.lane.b32.xlu0 %v1718_v46, %s1526_s29  ;;  %s1449_s12 = sshll.u32 %s1539_s25, 4  ;;  %s1450_s12 = int_to_ptr.vmem [resolvable:$false] %s1449_s12 }
 0x11b   : > { %s1451_s14 = scalar_lea.vmem %s1450_s12, 256 }
 0x11d   : > { %528 = vrot.lane.b32.xlu1 %v1716_v45, %s1525_s27  ;;  %s296_s27 = scalar_lea.vmem [#allocation8], %s1206_s10 }
 0x11e   : > { %508 = vrot.lane.b32.xlu0 %v1718_v46, %s1527_s15 }
 0x121   : > { %550 = vrot.lane.b32.xlu1 %v1716_v45, %s1526_s29  ;;  %s1105_s29 = sshll.u32 %s296_s27, 4  ;;  %s1106_s29 = int_to_ptr.vmem [resolvable:$true] %s1105_s29 }
 0x122   : > { %464 = vrot.lane.b32.xlu0 %v1718_v46, %s1528_s17  ;;  %p1452_p6 = scmp.lt.s32.totalorder %s1106_s29, %s1450_s12 }
 0x125   : > { %506 = vrot.lane.b32.xlu1 %v1716_v45, %s1527_s15 }
 0x126   : > { %486 = vrot.lane.b32.xlu0 %v1718_v46, %s1529_s18 }
 0x129   : > { %462 = vrot.lane.b32.xlu1 %v1716_v45, %s1528_s17 }
 0x12a   : > { %419 = vrot.lane.b32.xlu0 %v1718_v46, %s1530_s19 }
 0x12d   : > { %484 = vrot.lane.b32.xlu1 %v1716_v45, %s1529_s18  ;;  %s1828_s18 = scalar_lea.hbm %s1871_s6, %s1219_s1 }
 0x12e   : > { %442 = vrot.lane.b32.xlu0 %v1718_v46, %s1531_s13 }
 0x131   : > { %417 = vrot.lane.b32.xlu1 %v1716_v45, %s1530_s19  ;;  %s1091_s19 = scalar_lea.sflag [#allocation4], %s1693_s20 }
 0x132   : > { %703 = vperm.xlu0 %1311, %v1708_v1  }
 0x135   : > { %440 = vrot.lane.b32.xlu1 %v1716_v45, %s1531_s13  ;;  %s1445_s13 = scalar_lea.vmem %s1106_s29, 128 }
 0x136   : > { %p1446_p7 = scmp.ne.s32.totalorder %s1106_s29, %s1445_s13  ;;  %p1453_p12 = scmp.lt.s32.totalorder %s1451_s14, %s1445_s13 }
 0x138   : > { %p1447_p1 = pnand %p1446_p7, %p1889_p11  ;;  %p1454_p3 = por %p1453_p12, %p1452_p6 }
 0x139   : > { %606 = vperm.xlu1 %1310, %v1708_v1  }
 0x13a   : > { %p1448_p2 = pneg %p1447_p1 }
 0x13c   : > { %p1455_p9 = pnand %p1454_p3, %p1448_p2 }
 0x13d   : > { %1312 = vset.pattern.permute.xlu1 %v1534_v49 }
 0x13e   : > { %709 = vperm.xlu1 %1312, %v1708_v1  }
 0x187   : > { %v573_v56 = vpop.permute.xlu1 %572 }
 0x188   : > { %v531_v57 = vpop.permute.xlu0 %530 }
 0x18b   : > { %v575_v60 = vpop.permute.xlu1 %574 }
 0x18c   : > { %v553_v61 = vpop.permute.xlu0 %552  ;;  %v577_v62 = vsel %vm576_vm3, %v573_v56, %v575_v60  ;;  %v578_v63 = vsel %vm576_vm3, %v575_v60, %v573_v56 }
 0x18d   : > { %v592_v2 = vmul.f32 %v585_v58, %v577_v62  ;;  %v593_v4 = vmul.f32 %v589_v59, %v578_v63  ;;  %v426_v58 = vld [vmem:[#allocation7] sm:$0x3]  ;;  %v448_v59 = vld [vmem:[#allocation7 + $0x2] sm:$0x3] }
 0x18e   : > { %v431_v63 = vrot.slane %v426_v58, %v1741_v53  ;;  %v453_v3 = vrot.slane %v448_v59, %v1741_v53  ;;  %v301_v53 = vld [vmem:[#allocation5 + $0x8] sm:$0xff] }
 0x18f   : > { %v529_v6 = vpop.permute.xlu1 %528  ;;  %v604_v7 = vpack.c.bf16 %v593_v4, %v593_v4  ;;  %v603_v8 = vpack.c.bf16 %v592_v2, %v592_v2  ;;  %v435_v2 = vrot.slane %v426_v58, %v1743_v54  ;;  %v457_v4 = vrot.slane %v448_v59, %v1743_v54 }
 0x190   : > { %v509_v9 = vpop.permute.xlu0 %508  ;;  %v533_v16 = vsel %vm532_vm4, %v529_v6, %v531_v57  ;;  %v534_v17 = vsel %vm532_vm4, %v531_v57, %v529_v6  ;;  %v1535_v54 = vmov 5   ;;  %vm1040_vm4 = vcmask 130048  }
 0x191   : > { %1207 = vmatprep.subr.msk.bf16.mxu0 %vm302_vm0, %v604_v7  ;;  %v614_v12 = vsel %vm302_vm0, %v603_v8, 0  ;;  %v548_v23 = vmul.f32 %v541_v10, %v533_v16  ;;  %v549_v24 = vmul.f32 %v545_v11, %v534_v17  ;;  %1313 = vset.pattern.permute.xlu1 %v1535_v54 }
 0x192   : > { %626 = vmatpush1.bf16.msra.mxu0 %v614_v12  ;;  %1314 = vset.pattern.permute.xlu0 %v1535_v54 }
 0x193   : > { %v551_v18 = vpop.permute.xlu1 %550  ;;  %777 = vperm.xlu1 %1313, %v1708_v1   ;;  %782 = vperm.xlu0 %1314, %v301_v53  }
 0x194   : > { %v555_v19 = vsel %vm554_vm5, %v551_v18, %v553_v61  ;;  %v556_v20 = vsel %vm554_vm5, %v553_v61, %v551_v18  ;;  %v465_v25 = vpop.permute.xlu0 %464 }
 0x195   : > { %v570_v26 = vmul.f32 %v563_v13, %v555_v19  ;;  %v571_v27 = vmul.f32 %v567_v14, %v556_v20 }
 0x197   : > { %v507_v28 = vpop.permute.xlu1 %506  ;;  %v602_v29 = vpack.c.bf16 %v571_v27, %v549_v24  ;;  %v601_v30 = vpack.c.bf16 %v570_v26, %v548_v23 }
 0x198   : > { %v511_v31 = vsel %vm510_vm6, %v507_v28, %v509_v9  ;;  %v512_v32 = vsel %vm510_vm6, %v509_v9, %v507_v28  ;;  %v487_v37 = vpop.permute.xlu0 %486 }
 0x199   : > { %v526_v33 = vmul.f32 %v519_v21, %v511_v31  ;;  %v527_v34 = vmul.f32 %v523_v22, %v512_v32  ;;  %627 = vmatprep.subr.bf16.mxu0 %v602_v29  ;;  %v1536_v21 = vmov 6   ;;  %v1537_v22 = vmov 7  }
 0x19a   : > { %628 = vmatpush1.bf16.msra.mxu0 %v601_v30  ;;  %1315 = vset.pattern.permute.xlu1 %v1536_v21 }
 0x19b   : > { %v463_v38 = vpop.permute.xlu1 %462  ;;  %v600_v39 = vpack.c.bf16 %v527_v34, %v1718_v46  ;;  %v599_v40 = vpack.c.bf16 %v526_v33, %v1716_v45  ;;  %1316 = vset.pattern.permute.xlu0 %v1537_v22  ;;  %894 = vperm.xlu1 %1315, %v1708_v1  }
 0x19c   : > { %v467_v47 = vsel %vm466_vm7, %v463_v38, %v465_v25  ;;  %v468_v48 = vsel %vm466_vm7, %v465_v25, %v463_v38  ;;  %v420_v46 = vpop.permute.xlu0 %419  ;;  %906 = vperm.xlu0 %1316, %v1708_v1  }
 0x19d   : > { %629 = vmatprep.subr.bf16.mxu0 %v600_v39  ;;  %v482_v55 = vmul.f32 %v475_v41, %v468_v48  ;;  %v483_v45 = vmul.f32 %v479_v42, %v467_v47 }
 0x19e   : > { %630 = vmatpush1.bf16.msra.mxu0 %v599_v40 }
 0x19f   : > { %v485_v49 = vpop.permute.xlu1 %484  ;;  %898 = vperm.xlu1 %1315, %v301_v53  }
 0x1a0   : > { %v489_v50 = vsel %vm488_vm8, %v485_v49, %v487_v37  ;;  %v490_v51 = vsel %vm488_vm8, %v487_v37, %v485_v49  ;;  %v443_v7 = vpop.permute.xlu0 %442 }
 0x1a1   : > { %v504_v56 = vmul.f32 %v497_v43, %v490_v51  ;;  %v505_v57 = vmul.f32 %v501_v44, %v489_v50 }
 0x1a3   : > { %v418_v60 = vpop.permute.xlu1 %417  ;;  %v598_v61 = vpack.c.bf16 %v505_v57, %v483_v45  ;;  %v597_v62 = vpack.c.bf16 %v504_v56, %v482_v55  ;;  %1317 = vset.pattern.permute.xlu1 %v1537_v22 }
 0x1a4   : > { %v424_v5 = vsel %vm423_vm9, %v418_v60, %v420_v46  ;;  %v425_v6 = vsel %vm423_vm9, %v420_v46, %v418_v60  ;;  %910 = vperm.xlu1 %1317, %v301_v53  }
 0x1a5   : > { %631 = vmatprep.subr.bf16.mxu0 %v598_v61  ;;  %v438_v11 = vmul.f32 %v431_v63, %v425_v6  ;;  %v439_v12 = vmul.f32 %v435_v2, %v424_v5 }
 0x1a6   : > { %632 = vmatpush1.bf16.msra.mxu0 %v597_v62 }
 0x1a7   : > { %v441_v8 = vpop.permute.xlu1 %440 }
 0x1a8   : > { %v445_v9 = vsel %vm444_vm10, %v441_v8, %v443_v7  ;;  %v446_v10 = vsel %vm444_vm10, %v443_v7, %v441_v8 }
 0x1a9   : > { %v460_v13 = vmul.f32 %v453_v3, %v446_v10  ;;  %v461_v14 = vmul.f32 %v457_v4, %v445_v9 }
 0x1ab   : > { %v596_v15 = vpack.c.bf16 %v461_v14, %v439_v12  ;;  %v595_v16 = vpack.c.bf16 %v460_v13, %v438_v11 }
 0x1ad   : > { %633 = vmatprep.subr.bf16.mxu0 %v596_v15  ;;  %v704_v6 = vpop.permute.xlu0 %703 }
 0x1ae   : > { %634 = vmatpush1.bf16.msra.mxu0 %v595_v16 }
 0x1b1   : > { %1208 = vmatmul.mubr.msk.bf16.vlgmr.msra.gmra.mxu0 %vm609_vm11, %v594_v52 }
 0x1b4   : > { %v607_v17 = vpop.permute.xlu1 %606 }
 0x1b9   : > { %v710_v9 = vpop.permute.xlu1 %709 }
 0x271   : > { %v653_v18 = vpop.f32.mrf.mxu0 }
 0x272   : > { %v654_v19 = vadd.f32 %v653_v18, %v607_v17 }
 0x273   : > { %v655_v20 = vpop.f32.mrf.mxu0 }
 0x274   : > { %v660_v23 = vsel %vm302_vm0, %v654_v19, 0.0  ;;  %v656_v24 = vadd.f32 %v655_v20, %v607_v17 }
 0x275   : > { %v661_v25 = vrot.slane %v660_v23, 4  ;;  %v657_v26 = vpop.f32.mrf.mxu0 }
 0x276   : > { %v667_v27 = vsel %vm302_vm0, %v656_v24, 0.0 }
 0x277   : > { %v662_v28 = vadd.f32 %v661_v25, %v660_v23  ;;  %v668_v29 = vrot.slane %v667_v27, 4  ;;  %v658_v30 = vpop.f32.mrf.mxu0 }
 0x279   : > { %v663_v31 = vrot.slane %v662_v28, 2  ;;  %v669_v32 = vadd.f32 %v668_v29, %v667_v27 }
 0x27b   : > { %v664_v33 = vadd.f32 %v663_v31, %v662_v28  ;;  %v670_v34 = vrot.slane %v669_v32, 2 }
 0x27d   : > { %v665_v35 = vrot.slane %v664_v33, 1  ;;  %v671_v36 = vadd.f32 %v670_v34, %v669_v32 }
 0x27f   : > { %v666_v37 = vadd.f32 %v665_v35, %v664_v33  ;;  %v672_v38 = vrot.slane %v671_v36, 1 }
 0x281   : > { %v674_v39 = vmul.f32 0.25, %v666_v37  ;;  %v673_v40 = vadd.f32 %v672_v38, %v671_v36 }
 0x283   : > { %v676_v41 = vsub.f32 %v654_v19, %v674_v39  ;;  %v675_v42 = vmul.f32 0.25, %v673_v40 }
 0x285   : > { %v678_v43 = vmul.f32 %v676_v41, %v676_v41  ;;  %v677_v44 = vsub.f32 %v656_v24, %v675_v42 }
 0x287   : > { %v680_v47 = vsel %vm302_vm0, %v678_v43, 0.0  ;;  %v679_v48 = vmul.f32 %v677_v44, %v677_v44 }
 0x288   : > { %v681_v49 = vrot.slane %v680_v47, 4 }
 0x289   : > { %v687_v50 = vsel %vm302_vm0, %v679_v48, 0.0 }
 0x28a   : > { %v682_v51 = vadd.f32 %v681_v49, %v680_v47  ;;  %v688_v46 = vrot.slane %v687_v50, 4 }
 0x28c   : > { %v683_v55 = vrot.slane %v682_v51, 2  ;;  %v689_v45 = vadd.f32 %v688_v46, %v687_v50 }
 0x28e   : > { %v684_v56 = vadd.f32 %v683_v55, %v682_v51  ;;  %v690_v57 = vrot.slane %v689_v45, 2 }
 0x290   : > { %v685_v58 = vrot.slane %v684_v56, 1  ;;  %v691_v59 = vadd.f32 %v690_v57, %v689_v45 }
 0x292   : > { %v686_v60 = vadd.f32 %v685_v58, %v684_v56  ;;  %v692_v61 = vrot.slane %v691_v59, 1 }
 0x294   : > { %v694_v62 = vmul.f32 0.25, %v686_v60  ;;  %v693_v63 = vadd.f32 %v692_v61, %v691_v59 }
 0x296   : > { %v696_v2 = vadd.f32 1e-06, %v694_v62  ;;  %v695_v3 = vmul.f32 0.25, %v693_v63 }
 0x298   : > { %1333 = vrsqrt.f32 %v696_v2  ;;  %v697_v4 = vadd.f32 1e-06, %v695_v3 }
 0x29a   : > { %1335 = vrsqrt.f32 %v697_v4 }
 0x2a5   : > { %v1334_v5 = vpop.eup %1333 }
 0x2a6   : > { %v700_v7 = vmul.f32 %v1334_v5, %v676_v41 }
 0x2a7   : > { %v1336_v8 = vpop.eup %1335 }
 0x2a8   : > { %v701_v10 = vmul.f32 %v1336_v8, %v677_v44  ;;  %v706_v11 = vmul.f32 %v704_v6, %v700_v7 }
 0x2aa   : > { %v707_v12 = vmul.f32 %v704_v6, %v701_v10  ;;  %v712_v13 = vadd.f32 %v710_v9, %v706_v11 }
 0x2ac   : > { %v713_v14 = vadd.f32 %v710_v9, %v707_v12  ;;  %v714_v15 = vmul.f32 0.70710677, %v712_v13  ;;  %v766_v2 = vmul.f32 0.5, %v712_v13  ;;  %v1320_v12 = vld [vmem:[%s1869_s4] sm:$0xff]  }
 0x2ae   : > { %v715_v16 = vmul.f32 0.70710677, %v713_v14  ;;  %v716_v52 = vand.u32 2147483647, %v714_v15  ;;  %vm760_vm12 = vcmp.ge.f32.partialorder %v714_v15, 0.0  ;;  %v767_v5 = vmul.f32 0.5, %v713_v14  ;;  %v778_v15 = vpop.permute.xlu1 %777 }
 0x2b0   : > { %v717_v53 = vand.u32 2147483647, %v715_v16  ;;  %v718_v54 = vmul.f32 0.3275911, %v716_v52  ;;  %v748_v20 = vsub.f32 0.0, %v716_v52  ;;  %vm761_vm13 = vcmp.ge.f32.partialorder %v715_v16, 0.0  ;;  %v783_v16 = vpop.permute.xlu0 %782 }
 0x2b2   : > { %v719_v17 = vmul.f32 0.3275911, %v717_v53  ;;  %v720_v18 = vadd.f32 1.0, %v718_v54  ;;  %v749_v23 = vsub.f32 0.0, %v717_v53  ;;  %v750_v27 = vmul.f32 %v748_v20, %v716_v52 }
 0x2b4   : > { %v721_v19 = vadd.f32 1.0, %v719_v17  ;;  %1337 = vrcp.f32 %v720_v18  ;;  %v751_v30 = vmul.f32 %v749_v23, %v717_v53  ;;  %v752_v32 = vmul.f32 1.442695, %v750_v27 }
 0x2b6   : > { %1339 = vrcp.f32 %v721_v19  ;;  %v754_v34 = vmul.f32 1.442695, %v751_v30 }
 0x2b7   : > { %1341 = vpow2.f32 %v752_v32 }
 0x2b8   : > { %1343 = vpow2.f32 %v754_v34 }
 0x2c1   : > { %v1338_v21 = vpop.eup %1337 }
 0x2c2   : > { %v724_v22 = vmul.f32 %v1338_v21, %v720_v18  ;;  %v1538_v18 = vmov 8  }
 0x2c3   : > { %v1340_v24 = vpop.eup %1339  ;;  %1318 = vset.pattern.permute.xlu1 %v1538_v18  ;;  %1319 = vset.pattern.permute.xlu0 %v1538_v18 }
 0x2c4   : > { %v725_v25 = vmul.f32 %v1340_v24, %v721_v19  ;;  %v726_v26 = vsub.f32 2.0, %v724_v22  ;;  %v1342_v55 = vpop.eup %1341  ;;  %1037 = vperm.xlu1 %1318, %v1708_v1  }
 0x2c5   : > { %v1344_v57 = vpop.eup %1343 }
 0x2c6   : > { %v727_v28 = vsub.f32 2.0, %v725_v25  ;;  %v728_v29 = vmul.f32 %v1338_v21, %v726_v26 }
 0x2c8   : > { %v729_v31 = vmul.f32 %v1340_v24, %v727_v28  ;;  %v730_v33 = vmul.f32 1.0614054, %v728_v29 }
 0x2ca   : > { %v731_v35 = vmul.f32 1.0614054, %v729_v31  ;;  %v732_v36 = vadd.f32 -1.4531521, %v730_v33 }
 0x2cc   : > { %v733_v37 = vadd.f32 -1.4531521, %v731_v35  ;;  %v734_v38 = vmul.f32 %v732_v36, %v728_v29 }
 0x2ce   : > { %v735_v39 = vmul.f32 %v733_v37, %v729_v31  ;;  %v736_v40 = vadd.f32 1.4214138, %v734_v38 }
 0x2d0   : > { %v737_v41 = vadd.f32 1.4214138, %v735_v39  ;;  %v738_v42 = vmul.f32 %v736_v40, %v728_v29 }
 0x2d2   : > { %v739_v43 = vmul.f32 %v737_v41, %v729_v31  ;;  %v740_v44 = vadd.f32 -0.28449672, %v738_v42 }
 0x2d4   : > { %v741_v47 = vadd.f32 -0.28449672, %v739_v43  ;;  %v742_v48 = vmul.f32 %v740_v44, %v728_v29 }
 0x2d6   : > { %v743_v49 = vmul.f32 %v741_v47, %v729_v31  ;;  %v744_v50 = vadd.f32 0.2548296, %v742_v48 }
 0x2d8   : > { %v745_v51 = vadd.f32 0.2548296, %v743_v49  ;;  %v746_v46 = vmul.f32 %v744_v50, %v728_v29 }
 0x2da   : > { %v747_v45 = vmul.f32 %v745_v51, %v729_v31  ;;  %v756_v56 = vmul.f32 %v1342_v55, %v746_v46 }
 0x2dc   : > { %v757_v58 = vmul.f32 %v1344_v57, %v747_v45  ;;  %v758_v59 = vsub.f32 1.0, %v756_v56 }
 0x2de   : > { %v759_v60 = vsub.f32 1.0, %v757_v58  ;;  %v762_v61 = vsub.f32 0.0, %v758_v59 }
 0x2e0   : > { %v763_v62 = vsub.f32 0.0, %v759_v60  ;;  %v764_v63 = vsel %vm760_vm12, %v758_v59, %v762_v61 }
 0x2e1   : > { %v768_v3 = vadd.f32 1.0, %v764_v63 }
 0x2e2   : > { %v765_v4 = vsel %vm761_vm13, %v759_v60, %v763_v62 }
 0x2e3   : > { %v769_v6 = vadd.f32 1.0, %v765_v4  ;;  %v770_v7 = vmul.f32 %v768_v3, %v766_v2  ;;  %v895_v2 = vpop.permute.xlu1 %894 }
 0x2e5   : > { %v771_v8 = vmul.f32 %v769_v6, %v767_v5  ;;  %v774_v9 = vpack.c.bf16 %v770_v7, %v770_v7 }
 0x2e7   : > { %v775_v10 = vpack.c.bf16 %v771_v8, %v771_v8  ;;  %v796_v11 = vsel %vm794_vm14, %v774_v9, 0  ;;  %v899_v3 = vpop.permute.xlu1 %898  ;;  %v907_v8 = vpop.permute.xlu0 %906 }
 0x2e9   : > { %1210 = vmatprep.subr.msk.bf16.mxu1 %vm794_vm14, %v775_v10 }
 0x2ea   : > { %816 = vmatpush1.bf16.msra.mxu1 %v796_v11 }
 0x2eb   : > { %v911_v9 = vpop.permute.xlu1 %910 }
 0x2ed   : > { %1211 = vmatmul.mubr.msk.bf16.vlgmr.msra.gmra.mxu1 %vm790_vm15, %v1320_v12 }
 0x2ee   : > { %1076 = vmatprep.mubr.bf16.mxu1 %v1522_v0 }
 0x3ad   : > { %v835_v13 = vpop.f32.mrf.mxu1 }
 0x3ae   : > { %v836_v53 = vadd.f32 %v835_v13, %v778_v15 }
 0x3af   : > { %v837_v14 = vpop.f32.mrf.mxu1 }
 0x3b0   : > { %v838_v19 = vadd.f32 %v837_v14, %v778_v15 }
 0x3b1   : > { %v839_v52 = vpop.f32.mrf.mxu1 }
 0x3b2   : > { %v840_v54 = vadd.f32 %v839_v52, %v783_v16 }
 0x3b3   : > { %v841_v17 = vpop.f32.mrf.mxu1 }
 0x3b4   : > { %v844_v20 = vadd.f32 %v840_v54, %v836_v53  ;;  %v842_v21 = vadd.f32 %v841_v17, %v783_v16 }
 0x3b6   : > { %v845_v22 = vrot.slane %v844_v20, 4  ;;  %v851_v23 = vadd.f32 %v842_v21, %v838_v19 }
 0x3b8   : > { %v846_v24 = vadd.f32 %v845_v22, %v844_v20  ;;  %v852_v0 = vrot.slane %v851_v23, 4 }
 0x3ba   : > { %v847_v25 = vrot.slane %v846_v24, 2  ;;  %v853_v26 = vadd.f32 %v852_v0, %v851_v23 }
 0x3bc   : > { %v848_v27 = vadd.f32 %v847_v25, %v846_v24  ;;  %v854_v28 = vrot.slane %v853_v26, 2 }
 0x3be   : > { %v849_v29 = vrot.slane %v848_v27, 1  ;;  %v855_v30 = vadd.f32 %v854_v28, %v853_v26 }
 0x3c0   : > { %v850_v31 = vadd.f32 %v849_v29, %v848_v27  ;;  %v856_v32 = vrot.slane %v855_v30, 1 }
 0x3c2   : > { %v859_v33 = vmul.f32 0.0625, %v850_v31  ;;  %v857_v34 = vadd.f32 %v856_v32, %v855_v30 }
 0x3c4   : > { %v863_v35 = vsub.f32 %v840_v54, %v859_v33  ;;  %v860_v36 = vmul.f32 0.0625, %v857_v34  ;;  %v861_v37 = vsub.f32 %v836_v53, %v859_v33 }
 0x3c6   : > { %v867_v38 = vmul.f32 %v863_v35, %v863_v35  ;;  %v864_v39 = vsub.f32 %v842_v21, %v860_v36  ;;  %v862_v1 = vsub.f32 %v838_v19, %v860_v36  ;;  %v865_v40 = vmul.f32 %v861_v37, %v861_v37 }
 0x3c8   : > { %v868_v41 = vmul.f32 %v864_v39, %v864_v39  ;;  %v866_v42 = vmul.f32 %v862_v1, %v862_v1  ;;  %v869_v43 = vadd.f32 %v867_v38, %v865_v40 }
 0x3ca   : > { %v870_v44 = vrot.slane %v869_v43, 4  ;;  %v876_v47 = vadd.f32 %v868_v41, %v866_v42 }
 0x3cc   : > { %v871_v48 = vadd.f32 %v870_v44, %v869_v43  ;;  %v877_v49 = vrot.slane %v876_v47, 4 }
 0x3ce   : > { %v872_v50 = vrot.slane %v871_v48, 2  ;;  %v878_v51 = vadd.f32 %v877_v49, %v876_v47 }
 0x3d0   : > { %v873_v46 = vadd.f32 %v872_v50, %v871_v48  ;;  %v879_v55 = vrot.slane %v878_v51, 2 }
 0x3d2   : > { %v874_v45 = vrot.slane %v873_v46, 1  ;;  %v880_v56 = vadd.f32 %v879_v55, %v878_v51 }
 0x3d4   : > { %v875_v57 = vadd.f32 %v874_v45, %v873_v46  ;;  %v881_v58 = vrot.slane %v880_v56, 1 }
 0x3d6   : > { %v882_v59 = vadd.f32 %v881_v58, %v880_v56  ;;  %v883_v60 = vmul.f32 0.0625, %v875_v57 }
 0x3d8   : > { %v884_v61 = vmul.f32 0.0625, %v882_v59  ;;  %v885_v62 = vadd.f32 1e-06, %v883_v60 }
 0x3da   : > { %v886_v63 = vadd.f32 1e-06, %v884_v61  ;;  %1345 = vrsqrt.f32 %v885_v62 }
 0x3dc   : > { %1347 = vrsqrt.f32 %v886_v63 }
 0x3e7   : > { %v1346_v4 = vpop.eup %1345 }
 0x3e8   : > { %v889_v5 = vmul.f32 %v1346_v4, %v861_v37  ;;  %v891_v6 = vmul.f32 %v1346_v4, %v863_v35 }
 0x3e9   : > { %v1348_v7 = vpop.eup %1347 }
 0x3ea   : > { %v890_v10 = vmul.f32 %v1348_v7, %v862_v1  ;;  %v901_v11 = vmul.f32 %v895_v2, %v889_v5  ;;  %v892_v12 = vmul.f32 %v1348_v7, %v864_v39  ;;  %v903_v13 = vmul.f32 %v899_v3, %v891_v6 }
 0x3ec   : > { %v902_v15 = vmul.f32 %v895_v2, %v890_v10  ;;  %v904_v14 = vmul.f32 %v899_v3, %v892_v12  ;;  %v1788_v16 = vadd.f32 %v907_v8, %v901_v11  ;;  %v1790_v52 = vadd.f32 %v911_v9, %v903_v13 }
 0x3ee   : > { %v1792_v53 = vadd.f32 %v907_v8, %v902_v15  ;;  %v1795_v54 = vmul.f32 0.70710677, %v1788_v16  ;;  %v1797_v17 = vadd.f32 %v911_v9, %v904_v14  ;;  %v1800_v18 = vmul.f32 0.70710677, %v1790_v52 }
 0x3f0   : > { %v1803_v19 = vmul.f32 0.70710677, %v1792_v53  ;;  %v921_v20 = vand.u32 2147483647, %v1795_v54  ;;  %v1807_v21 = vmul.f32 0.70710677, %v1797_v17 }
 0x3f1   : > { %v923_v22 = vand.u32 2147483647, %v1800_v18  ;;  %vm1009_vm0 = vcmp.ge.f32.partialorder %v1795_v54, 0.0  ;;  %vm1011_vm1 = vcmp.ge.f32.partialorder %v1800_v18, 0.0  ;;  %v1021_v54 = vmul.f32 0.5, %v1788_v16 }
 0x3f2   : > { %v922_v23 = vand.u32 2147483647, %v1803_v19  ;;  %v925_v24 = vmul.f32 0.3275911, %v921_v20  ;;  %v924_v0 = vand.u32 2147483647, %v1807_v21 }
 0x3f3   : > { %v927_v25 = vmul.f32 0.3275911, %v923_v22  ;;  %v985_v32 = vsub.f32 0.0, %v921_v20  ;;  %v987_v34 = vsub.f32 0.0, %v923_v22  ;;  %vm1010_vm2 = vcmp.ge.f32.partialorder %v1803_v19, 0.0 }
 0x3f4   : > { %v926_v26 = vmul.f32 0.3275911, %v922_v23  ;;  %v929_v27 = vadd.f32 1.0, %v925_v24  ;;  %v928_v28 = vmul.f32 0.3275911, %v924_v0  ;;  %v986_v37 = vsub.f32 0.0, %v922_v23 }
 0x3f5   : > { %v931_v29 = vadd.f32 1.0, %v927_v25  ;;  %v989_v41 = vmul.f32 %v985_v32, %v921_v20  ;;  %v988_v43 = vsub.f32 0.0, %v924_v0  ;;  %v991_v44 = vmul.f32 %v987_v34, %v923_v22  ;;  %v1033_v16 = vld [vmem:[%s1870_s5] sm:$0x3] }
 0x3f6   : > { %v930_v30 = vadd.f32 1.0, %v926_v26  ;;  %1349 = vrcp.f32 %v929_v27  ;;  %v932_v31 = vadd.f32 1.0, %v928_v28  ;;  %v990_v50 = vmul.f32 %v986_v37, %v922_v23 }
 0x3f7   : > { %1351 = vrcp.f32 %v931_v29  ;;  %v993_v56 = vmul.f32 1.442695, %v989_v41  ;;  %v992_v59 = vmul.f32 %v988_v43, %v924_v0  ;;  %v997_v60 = vmul.f32 1.442695, %v991_v44 }
 0x3f8   : > { %1353 = vrcp.f32 %v930_v30  ;;  %v995_v63 = vmul.f32 1.442695, %v990_v50  ;;  %vm1012_vm3 = vcmp.ge.f32.partialorder %v1807_v21, 0.0  ;;  %v1024_v19 = vmul.f32 0.5, %v1797_v17 }
 0x3f9   : > { %1355 = vrcp.f32 %v932_v31  ;;  %v999_v8 = vmul.f32 1.442695, %v992_v59 }
 0x3fa   : > { %1357 = vpow2.f32 %v993_v56 }
 0x3fb   : > { %1359 = vpow2.f32 %v997_v60 }
 0x3fc   : > { %1361 = vpow2.f32 %v995_v63 }
 0x3fd   : > { %1363 = vpow2.f32 %v999_v8 }
 0x403   : > { %v1350_v33 = vpop.eup %1349 }
 0x404   : > { %v1352_v35 = vpop.eup %1351  ;;  %v937_v36 = vmul.f32 %v1350_v33, %v929_v27 }
 0x405   : > { %v1354_v38 = vpop.eup %1353  ;;  %v939_v39 = vmul.f32 %v1352_v35, %v931_v29 }
 0x406   : > { %v938_v1 = vmul.f32 %v1354_v38, %v930_v30  ;;  %v941_v40 = vsub.f32 2.0, %v937_v36  ;;  %v1356_v47 = vpop.eup %1355 }
 0x407   : > { %v943_v42 = vsub.f32 2.0, %v939_v39  ;;  %v940_v51 = vmul.f32 %v1356_v47, %v932_v31 }
 0x408   : > { %v942_v48 = vsub.f32 2.0, %v938_v1  ;;  %v945_v49 = vmul.f32 %v1350_v33, %v941_v40 }
 0x409   : > { %v947_v46 = vmul.f32 %v1352_v35, %v943_v42  ;;  %v944_v57 = vsub.f32 2.0, %v940_v51  ;;  %v1358_v35 = vpop.eup %1357 }
 0x40a   : > { %v946_v55 = vmul.f32 %v1354_v38, %v942_v48  ;;  %v949_v45 = vmul.f32 1.0614054, %v945_v49  ;;  %v1360_v38 = vpop.eup %1359 }
 0x40b   : > { %v951_v58 = vmul.f32 1.0614054, %v947_v46  ;;  %v948_v2 = vmul.f32 %v1356_v47, %v944_v57  ;;  %v1362_v40 = vpop.eup %1361 }
 0x40c   : > { %v950_v61 = vmul.f32 1.0614054, %v946_v55  ;;  %v953_v62 = vadd.f32 -1.4531521, %v949_v45  ;;  %v1364_v50 = vpop.eup %1363 }
 0x40d   : > { %v955_v3 = vadd.f32 -1.4531521, %v951_v58  ;;  %v952_v6 = vmul.f32 1.0614054, %v948_v2 }
 0x40e   : > { %v954_v4 = vadd.f32 -1.4531521, %v950_v61  ;;  %v957_v5 = vmul.f32 %v953_v62, %v945_v49 }
 0x40f   : > { %v959_v7 = vmul.f32 %v955_v3, %v947_v46  ;;  %v956_v11 = vadd.f32 -1.4531521, %v952_v6 }
 0x410   : > { %v958_v9 = vmul.f32 %v954_v4, %v946_v55  ;;  %v961_v10 = vadd.f32 1.4214138, %v957_v5  ;;  %v1023_v4 = vmul.f32 0.5, %v1790_v52 }
 0x411   : > { %v963_v12 = vadd.f32 1.4214138, %v959_v7  ;;  %v960_v14 = vmul.f32 %v956_v11, %v948_v2 }
 0x412   : > { %v962_v13 = vadd.f32 1.4214138, %v958_v9  ;;  %v965_v15 = vmul.f32 %v961_v10, %v945_v49 }
 0x413   : > { %v967_v20 = vmul.f32 %v963_v12, %v947_v46  ;;  %v964_v24 = vadd.f32 1.4214138, %v960_v14 }
 0x414   : > { %v966_v22 = vmul.f32 %v962_v13, %v946_v55  ;;  %v969_v23 = vadd.f32 -0.28449672, %v965_v15 }
 0x415   : > { %v971_v0 = vadd.f32 -0.28449672, %v967_v20  ;;  %v968_v27 = vmul.f32 %v964_v24, %v948_v2 }
 0x416   : > { %v970_v25 = vadd.f32 -0.28449672, %v966_v22  ;;  %v973_v26 = vmul.f32 %v969_v23, %v945_v49 }
 0x417   : > { %v975_v28 = vmul.f32 %v971_v0, %v947_v46  ;;  %v972_v31 = vadd.f32 -0.28449672, %v968_v27 }
 0x418   : > { %v974_v29 = vmul.f32 %v970_v25, %v946_v55  ;;  %v977_v30 = vadd.f32 0.2548296, %v973_v26 }
 0x419   : > { %v979_v32 = vadd.f32 0.2548296, %v975_v28  ;;  %v976_v36 = vmul.f32 %v972_v31, %v948_v2 }
 0x41a   : > { %v978_v33 = vadd.f32 0.2548296, %v974_v29  ;;  %v981_v34 = vmul.f32 %v977_v30, %v945_v49 }
 0x41b   : > { %v983_v37 = vmul.f32 %v979_v32, %v947_v46  ;;  %v980_v41 = vadd.f32 0.2548296, %v976_v36 }
 0x41c   : > { %v982_v39 = vmul.f32 %v978_v33, %v946_v55  ;;  %v1001_v1 = vmul.f32 %v1358_v35, %v981_v34 }
 0x41d   : > { %v1003_v42 = vmul.f32 %v1360_v38, %v983_v37  ;;  %v984_v47 = vmul.f32 %v980_v41, %v948_v2  ;;  %v1022_v2 = vmul.f32 0.5, %v1792_v53  ;;  %v1038_v53 = vpop.permute.xlu1 %1037 }
 0x41e   : > { %v1002_v43 = vmul.f32 %v1362_v40, %v982_v39  ;;  %v1005_v44 = vsub.f32 1.0, %v1001_v1 }
 0x41f   : > { %v1007_v48 = vsub.f32 1.0, %v1003_v42  ;;  %v1004_v56 = vmul.f32 %v1364_v50, %v984_v47 }
 0x420   : > { %v1006_v51 = vsub.f32 1.0, %v1002_v43  ;;  %v1013_v45 = vsub.f32 0.0, %v1005_v44 }
 0x421   : > { %v1015_v49 = vsub.f32 0.0, %v1007_v48  ;;  %v1008_v46 = vsub.f32 1.0, %v1004_v56 }
 0x422   : > { %v1014_v57 = vsub.f32 0.0, %v1006_v51  ;;  %v1017_v58 = vsel %vm1009_vm0, %v1005_v44, %v1013_v45 }
 0x423   : > { %v1019_v55 = vsel %vm1011_vm1, %v1007_v48, %v1015_v49  ;;  %v1025_v60 = vadd.f32 1.0, %v1017_v58  ;;  %v1016_v62 = vsub.f32 0.0, %v1008_v46 }
 0x424   : > { %v1018_v59 = vsel %vm1010_vm2, %v1006_v51, %v1014_v57  ;;  %v1027_v63 = vadd.f32 1.0, %v1019_v55 }
 0x425   : > { %v1026_v61 = vadd.f32 1.0, %v1018_v59  ;;  %v1020_v3 = vsel %vm1012_vm3, %v1008_v46, %v1016_v62  ;;  %v1029_v6 = vmul.f32 %v1025_v60, %v1021_v54 }
 0x426   : > { %v1028_v5 = vadd.f32 1.0, %v1020_v3  ;;  %v1031_v7 = vmul.f32 %v1027_v63, %v1023_v4 }
 0x427   : > { %v1030_v18 = vmul.f32 %v1026_v61, %v1022_v2 }
 0x428   : > { %v1032_v8 = vmul.f32 %v1028_v5, %v1024_v19  ;;  %v1034_v10 = vpack.c.bf16 %v1031_v7, %v1029_v6 }
 0x42a   : > { %v1035_v9 = vpack.c.bf16 %v1032_v8, %v1030_v18 }
 0x42c   : > { %1058 = vmatprep.subr.bf16.mxu1 %v1035_v9 }
 0x42d   : > { %1059 = vmatpush1.bf16.msra.mxu1 %v1034_v10 }
 0x430   : > { %1212 = vmatmul.mubr.msk.bf16.vlgmr.msra.gmra.mxu1 %vm1040_vm4, %v1033_v16 }
 0x4f0   : > { %v1078_v52 = vpop.f32.mrf.mxu1 }
 0x4f1   : > { %v1079_v21 = vadd.f32 %v1078_v52, %v1038_v53 }
 0x4f2   : > { %v1080_v17 = vpop.f32.mrf.mxu1 }
 0x4f3   : > { %v1081_v11 = vadd.f32 %v1080_v17, %v1038_v53 }
 0x4f4   : > { %v1082_v12 = vpop.f32.mrf.mxu1 }
 0x4f5   : > { %v1087_v13 = vcombine.low %v1079_v21, %v1081_v11 }
 0x4f6   : > { %v1083_v15 = vpop.f32.mrf.mxu1 }
 0x4f7   : > { %1089 = vst [vmem:[%s296_s27] sm:$0xff] %v1087_v13 }
 0x4f8   : > { %1458 = shalt.err (!%p1455_p9)
}
 0x4f9   : > { %s1459_s8 = scalar_lea.hbm %s1828_s18, 128  ;;  %s1463_s30 = scalar_lea.hbm %s1871_s6, 256 }
 0x4fa   : > { %p1460_p13 = scmp.ne.s32.totalorder %s1828_s18, %s1459_s8  ;;  %p1464_p0 = scmp.lt.s32.totalorder %s1828_s18, %s1871_s6 }
 0x4fb   : > { %p1465_p4 = scmp.lt.s32.totalorder %s1463_s30, %s1459_s8 }
 0x4fc   : > { %p1461_p5 = pnand %p1460_p13, %p1889_p11 }
 0x4fd   : > { %p1466_p8 = por %p1465_p4, %p1464_p0 }
 0x4fe   : > { %p1462_p10 = pneg %p1461_p5 }
 0x500   : > { %p1467_p7 = pnand %p1466_p8, %p1462_p10 }
 0x502   : > { %1470 = shalt.err (!%p1467_p7)
}
 0x503   : > { %1230 = dma.vmem_to_hbm [thread:$0]  (%p1889_p11), %s1106_s29, 128, %s1828_s18, %s1091_s19  }
 0x504 PF: > { %s1117_s1 = sand.u32 1, %s1501_s21   ;;  %p1890_p1 = scmp.ne.s32.totalorder %s1878_s28, 0 }
 0x505   : > { %p1891_p2 = scmp.ge.s32.totalorder %s1513_s24, 2  ;;  %s1118_s27 = scalar_lea.sflag [#allocation4], %s1117_s1 }
 0x507   : > { %p1244_p6 = pnand %p1891_p2, %p1890_p1 }
 0x509   : > { %p1245_p12 = pneg %p1244_p6 }
 0x50b   : > { %1496 = dma.done.wait (%p1245_p12), %s1118_s27, 128  }
 0x50c   : > { %1498 = vsyncadd (%p1245_p12), %s1118_s27, 4294967168  ;;  %p20_p3 = scmp.ge.s32.totalorder %s1647_s26, 4   ;;  %s1892_s21 = smov %s1505_s22 }
 0x50d   : > { %s1893_s22 = smov %s1509_s23  ;;  %s1894_s23 = smov %s1656_s9 }
 0x50e   : > { %s1895_s24 = smov %s1647_s26  ;;  %22 = sbr.rel (!%p20_p3) target bundleno = 8 (0x8), region = 104 }
 0x513   :  { %1123 = vsyncpa [#allocation3], 1 }
 0x514   :  { %1125 = vsyncpa [#allocation3 + $0x1], 1 }
 0x515   :  { %1126 = vsyncpa [#allocation6], 1 }
 0x516   :  { %1127 = vsyncpa [#allocation4], 1 }
 0x517   :  { %1129 = vsyncpa [#allocation4 + $0x1], 1 }

</bundles_post_ra>
